<compile_context>
chip_gen: v7x
topology: tpu7x:2x2x1
jax: 0.10.0
libtpu: 0.0.40
codegen_flags: <defaults>
</compile_context>

<pallas_src>
import jax
import jax.numpy as jnp
from jax.experimental import pallas as pl
from jax.experimental.pallas import tpu as pltpu

# ----------------------------- problem sizes -------------------------------
N_CONS = 16          # total constraint nodes (8 per graph)
N_VARS = 32          # total variable nodes (16 per graph)
D = 32               # common.embd_size
D2 = 2 * D
CONS_FEAT = 2        # raw constraint features
VAR_FEAT = 9         # raw variable features
FEAT_PAD = 16        # raw features zero-padded to a common sublane-aligned width
NUM_GRAPHS = 2

# ------------------------- packed-slab row offsets --------------------------
# w32 slab: every [*, D] weight matrix; segments padded to multiples of 8 rows
# so every in-kernel slice start is sublane-aligned.
OFF_ECW1 = 0               # [FEAT_PAD, D]  (rows >= CONS_FEAT are zero)
OFF_EVW1 = 16              # [FEAT_PAD, D]  (rows >= VAR_FEAT are zero)
OFF_ECW2 = 32
OFF_EVW2 = 64
OFF_ENC_WV_SELF = 96
OFF_ENC_WV_AGG = 128
OFF_ENC_WC_SELF = 160
OFF_ENC_WC_AGG = 192
OFF_DEC_WV_SELF = 224
OFF_DEC_WV_AGG = 256
OFF_DEC_WC_SELF = 288
OFF_DEC_WC_AGG = 320
OFF_RC_WMU = 352
OFF_RC_WLV = 384
OFF_RV_WMU = 416
OFF_RV_WLV = 448
W32_ROWS = 480

# b32 slab: all [1, D] biases plus the mask token (row index in the slab).
B_ECB1, B_ECB2, B_EVB1, B_EVB2 = 0, 1, 2, 3
B_ENC_BV, B_ENC_BC, B_DEC_BV, B_DEC_BC = 4, 5, 6, 7
B_RC_BMU, B_RC_BLV, B_RV_BMU, B_RV_BLV = 8, 9, 10, 11
B_MASK_TOK = 12
B32_ROWS = 16

# h64 slab: predictor-head params (two heads fused -> hidden width 2*D lanes).
H_CW1Z = 0                 # [D, D2]
H_CW1H = 32
H_VW1Z = 64
H_VW1H = 96
H_CW2 = 128                # [D2, D2] (only lanes 0:2 nonzero)
H_VW2 = 192
H_CB1 = 256                # [1, D2]
H_VB1 = 257
H_CB2 = 258
H_VB2 = 259
H64_ROWS = 264

# data32 slab: per-step tensors with D lanes (eps, masks, labels, selectors).
D_EPS_C = 0                # [N_CONS, D]
D_EPS_V = 16               # [N_VARS, D]
D_CMISC = 48               # [N_CONS, D]  col 0 = row_mask
D_VMISC = 64               # [N_VARS, D]  col 0 = logits_label, col 1 = weights_label
D_GMISC = 96               # [NUM_GRAPHS, D]  cols 0:N_CONS = one-hot masked-cons
                           #   selector, col N_CONS = bias_label, col N_CONS+1 = degree_label
DATA32_ROWS = 104

_COMPILER_PARAMS = pltpu.CompilerParams(dimension_semantics=("arbitrary",))


# ----------------------------- pallas plumbing -----------------------------
def _vmem_spec(shape):
    nd = len(shape)
    return pl.BlockSpec(shape, lambda i, _nd=nd: (0,) * _nd)


# ------------------------------ fused kernel -------------------------------
def _fused_forward_kernel(xfeat_ref, a_ref, a_t_ref, data_ref,
                          w32_ref, b32_ref, h64_ref, out_ref):
    def dot(x, w):
        # TODO(synk): on v6e/v7x cast operands to bf16 here (keep f32 accumulate)
        #             once graph sizes grow past toy scale; f32 kept for exactness.
        return jnp.dot(x, w, preferred_element_type=jnp.float32)

    def w32(off, rows=D):
        return w32_ref[off:off + rows, :]

    def b32(row):
        return b32_ref[row:row + 1, :]

    def h64(off, rows):
        return h64_ref[off:off + rows, :]

    def relu(x):
        return jnp.maximum(x, 0.0)

    # ---- unpack data slab (static, aligned slices) ----
    x_cons = xfeat_ref[0:N_CONS, :]                               # [C, FEAT_PAD]
    x_vars = xfeat_ref[N_CONS:N_CONS + N_VARS, :]                 # [V, FEAT_PAD]
    a = a_ref[...]                                                # [C, V]
    a_t = a_t_ref[...]                                            # [V, C]
    eps_c = data_ref[D_EPS_C:D_EPS_C + N_CONS, :]
    eps_v = data_ref[D_EPS_V:D_EPS_V + N_VARS, :]
    cmisc = data_ref[D_CMISC:D_CMISC + N_CONS, :]
    vmisc = data_ref[D_VMISC:D_VMISC + N_VARS, :]
    gmisc = data_ref[D_GMISC:D_GMISC + NUM_GRAPHS, :]
    row_mask = cmisc[:, 0:1]                                      # [C, 1]
    logits_lbl = vmisc[:, 0:1]                                    # [V, 1]
    weights_lbl = vmisc[:, 1:2]                                   # [V, 1]
    sel = gmisc[:, 0:N_CONS]                                      # [G, C] one-hot
    bias_lbl = gmisc[:, N_CONS:N_CONS + 1]                        # [G, 1]
    deg_lbl = gmisc[:, N_CONS + 1:N_CONS + 2]                     # [G, 1]

    # ---- node embeddings (shared by original & masked graph) ----
    hc0 = relu(dot(x_cons, w32(OFF_ECW1, FEAT_PAD)) + b32(B_ECB1))
    hc0 = dot(hc0, w32(OFF_ECW2)) + b32(B_ECB2)
    hv0 = relu(dot(x_vars, w32(OFF_EVW1, FEAT_PAD)) + b32(B_EVB1))
    hv0 = dot(hv0, w32(OFF_EVW2)) + b32(B_EVB2)

    # ---- encoder GNN on the original graph (two lane-aligned dots per update) ----
    agg_v = dot(a_t, hc0)                                         # [V, D]
    z_v = relu(dot(hv0, w32(OFF_ENC_WV_SELF))
               + dot(agg_v, w32(OFF_ENC_WV_AGG)) + b32(B_ENC_BV))
    agg_c = dot(a, z_v)                                           # [C, D]
    z_c = relu(dot(hc0, w32(OFF_ENC_WC_SELF))
               + dot(agg_c, w32(OFF_ENC_WC_AGG)) + b32(B_ENC_BC))

    # ---- resample (lane-aligned mu / logvar, single exp on the critical path) ----
    def resample(z, wmu, bmu, wlv, blv, eps, n_nodes):
        mu = dot(z, wmu) + bmu
        logvar = dot(z, wlv) + blv
        std = jnp.exp(0.5 * logvar)
        z_new = mu + std * eps
        kl = -0.5 * jnp.sum(1.0 + logvar - mu * mu - std * std)   # scalar
        return z_new, kl / float(n_nodes)                         # per-node mean

    z_c, cons_kl = resample(z_c, w32(OFF_RC_WMU), b32(B_RC_BMU),
                            w32(OFF_RC_WLV), b32(B_RC_BLV), eps_c, N_CONS)
    z_v, var_kl = resample(z_v, w32(OFF_RV_WMU), b32(B_RV_BMU),
                           w32(OFF_RV_WLV), b32(B_RV_BLV), eps_v, N_VARS)

    # ---- decoder GNN on the masked graph (A_masked expressed via row_mask) ----
    keep = 1.0 - row_mask                                         # [C, 1]
    hc0_m = jnp.where(row_mask > 0.0, b32(B_MASK_TOK), hc0)       # mask-token swap
    agg_v = dot(a_t, hc0_m * keep)                                # == A_masked^T @ hc0_m
    h_v = relu(dot(hv0, w32(OFF_DEC_WV_SELF))
               + dot(agg_v, w32(OFF_DEC_WV_AGG)) + b32(B_DEC_BV))
    agg_c = dot(a, h_v) * keep                                    # == A_masked @ h_v
    h_c = relu(dot(hc0_m, w32(OFF_DEC_WC_SELF))
               + dot(agg_c, w32(OFF_DEC_WC_AGG)) + b32(B_DEC_BC))

    # ---- bias | degree heads (fused pair, masked constraints only) ----
    zc_sel = dot(sel, z_c)                                        # [G, D]
    hc_sel = dot(sel, h_c)                                        # [G, D]
    cons_hid = relu(dot(zc_sel, h64(H_CW1Z, D)) + dot(hc_sel, h64(H_CW1H, D))
                    + h64(H_CB1, 1))                              # [G, D2]
    cons_out = dot(cons_hid, h64(H_CW2, D2)) + h64(H_CB2, 1)      # [G, D2]; lanes 0:2 valid
    bias_pred = cons_out[:, 0:1]
    deg_pred = cons_out[:, 1:2]
    # predictor losses are means over the G masked constraints (as in the
    # reference predictors); the final /num_graphs happens in the wrapper,
    # matching the reference forward.
    cons_loss = jnp.sum((bias_pred - bias_lbl) ** 2) / float(NUM_GRAPHS)
    degree_loss = jnp.sum((deg_pred - deg_lbl) ** 2) / float(NUM_GRAPHS)

    # ---- logits | weights heads (fused pair, all variables) ----
    var_hid = relu(dot(z_v, h64(H_VW1Z, D)) + dot(h_v, h64(H_VW1H, D))
                   + h64(H_VB1, 1))                               # [V, D2]
    var_out = dot(var_hid, h64(H_VW2, D2)) + h64(H_VB2, 1)        # [V, D2]
    logits = var_out[:, 0:1]
    w_pred = var_out[:, 1:2]
    y = logits_lbl
    # stable BCE-with-logits
    bce = (jnp.maximum(logits, 0.0) - logits * y
           + jnp.log(1.0 + jnp.exp(-jnp.abs(logits))))
    logits_loss = jnp.sum(bce) / float(N_VARS)
    denom = jnp.maximum(jnp.sum(y), 1.0)
    weights_loss = jnp.sum(((w_pred - weights_lbl) ** 2) * y) / denom

    # ---- scalar stores of the six reduced losses (SMEM output) ----
    out_ref[0] = cons_kl
    out_ref[1] = var_kl
    out_ref[2] = cons_loss
    out_ref[3] = degree_loss
    out_ref[4] = logits_loss
    out_ref[5] = weights_loss
    out_ref[6] = jnp.float32(0.0)
    out_ref[7] = jnp.float32(0.0)


# ----------------------------- parameter init ------------------------------
def init_linear(key, d_in, d_out, scale=0.1):
    k1, k2 = jax.random.split(key)
    w = scale * jax.random.normal(k1, (d_in, d_out), jnp.float32)
    b = scale * jax.random.normal(k2, (1, d_out), jnp.float32)
    return w, b


def init_mlp2(key, d_in, d_h, d_out):
    k1, k2 = jax.random.split(key)
    w1, b1 = init_linear(k1, d_in, d_h)
    w2, b2 = init_linear(k2, d_h, d_out)
    return w1, b1, w2, b2


def init_gnn(key, d):
    # Half-convolution weights kept split (self / aggregated neighbour part)
    # so the kernel can do two lane-aligned K=D dots instead of a lane concat.
    ks = jax.random.split(key, 4)
    wv_self, bv = init_linear(ks[0], d, d)
    wv_agg, _ = init_linear(ks[1], d, d)
    wc_self, bc = init_linear(ks[2], d, d)
    wc_agg, _ = init_linear(ks[3], d, d)
    return dict(wv_self=wv_self, wv_agg=wv_agg, bv=bv,
                wc_self=wc_self, wc_agg=wc_agg, bc=bc)


def init_resample(key, d):
    # mu / logvar projections kept as two separate [d, d] matmuls (lane-aligned).
    k1, k2 = jax.random.split(key)
    wmu, bmu = init_linear(k1, d, d)
    wlv, blv = init_linear(k2, d, d, scale=0.05)
    return dict(wmu=wmu, bmu=bmu, wlv=wlv, blv=blv)


def init_fused_heads(key, d, d_h):
    # Two MLP heads fused along the hidden dim; first layer split into the
    # z-part and h-part halves (no lane concat of [z | h] in-kernel); second
    # layer is block-diagonal.
    ka, kb = jax.random.split(key)
    w1a, b1a, w2a, b2a = init_mlp2(ka, 2 * d, d_h, 1)
    w1b, b1b, w2b, b2b = init_mlp2(kb, 2 * d, d_h, 1)
    w1 = jnp.concatenate([w1a, w1b], axis=1)                 # [2d, 2*d_h]
    w1z, w1h = w1[:d], w1[d:]                                # [d, 2*d_h] each
    b1 = jnp.concatenate([b1a, b1b], axis=1)                 # [1, 2*d_h]
    w2 = jnp.zeros((2 * d_h, 2), jnp.float32)
    w2 = w2.at[:d_h, 0:1].set(w2a).at[d_h:, 1:2].set(w2b)    # block-diagonal
    b2 = jnp.concatenate([b2a, b2b], axis=1)                 # [1, 2]
    return dict(w1z=w1z, w1h=w1h, b1=b1, w2=w2, b2=b2)


def init_params(key):
    keys = jax.random.split(key, 9)
    return {
        "emb_cons": init_mlp2(keys[0], CONS_FEAT, D, D),
        "emb_vars": init_mlp2(keys[1], VAR_FEAT, D, D),
        "encoder": init_gnn(keys[2], D),
        "decoder": init_gnn(keys[3], D),
        "resample_cons": init_resample(keys[4], D),
        "resample_vars": init_resample(keys[5], D),
        "cons_heads": init_fused_heads(keys[6], D, D),   # bias | degree
        "var_heads": init_fused_heads(keys[7], D, D),    # logits | weights
        "mask_token": 0.1 * jax.random.normal(keys[8], (1, D), jnp.float32),
    }


# --------------------------- host-side packing ------------------------------
def _pad_rows(w, rows):
    return jnp.zeros((rows, w.shape[1]), jnp.float32).at[:w.shape[0]].set(w)


def _pad_lanes(w, lanes):
    return jnp.zeros((w.shape[0], lanes), jnp.float32).at[:, :w.shape[1]].set(w)


def pack_params(p):
    """Packs all model parameters into 3 slabs (done once, host-side)."""
    ec_w1, ec_b1, ec_w2, ec_b2 = p["emb_cons"]
    ev_w1, ev_b1, ev_w2, ev_b2 = p["emb_vars"]
    enc, dec = p["encoder"], p["decoder"]
    rc, rv = p["resample_cons"], p["resample_vars"]
    w32 = jnp.concatenate([
        _pad_rows(ec_w1, FEAT_PAD), _pad_rows(ev_w1, FEAT_PAD),
        ec_w2, ev_w2,
        enc["wv_self"], enc["wv_agg"], enc["wc_self"], enc["wc_agg"],
        dec["wv_self"], dec["wv_agg"], dec["wc_self"], dec["wc_agg"],
        rc["wmu"], rc["wlv"], rv["wmu"], rv["wlv"],
    ], axis=0)
    assert w32.shape == (W32_ROWS, D)

    b32 = jnp.concatenate([
        ec_b1, ec_b2, ev_b1, ev_b2,
        enc["bv"], enc["bc"], dec["bv"], dec["bc"],
        rc["bmu"], rc["blv"], rv["bmu"], rv["blv"],
        p["mask_token"],
        jnp.zeros((B32_ROWS - 13, D), jnp.float32),
    ], axis=0)
    assert b32.shape == (B32_ROWS, D)

    ch, vh = p["cons_heads"], p["var_heads"]
    h64 = jnp.concatenate([
        ch["w1z"], ch["w1h"], vh["w1z"], vh["w1h"],
        _pad_lanes(ch["w2"], D2), _pad_lanes(vh["w2"], D2),
        ch["b1"], vh["b1"],
        _pad_lanes(ch["b2"], D2), _pad_lanes(vh["b2"], D2),
        jnp.zeros((H64_ROWS - 260, D2), jnp.float32),
    ], axis=0)
    assert h64.shape == (H64_ROWS, D2)
    return w32, b32, h64


def pack_data(data, eps_c, eps_v):
    """Packs per-step tensors into 4 arrays (features, A, A_T, misc slab)."""
    xfeat = jnp.zeros((N_CONS + N_VARS, FEAT_PAD), jnp.float32)
    xfeat = xfeat.at[:N_CONS, :CONS_FEAT].set(data["x_cons"])
    xfeat = xfeat.at[N_CONS:, :VAR_FEAT].set(data["x_vars"])

    cons_misc = jnp.zeros((N_CONS, D), jnp.float32).at[:, 0:1].set(data["row_mask"])
    var_misc = (jnp.zeros((N_VARS, D), jnp.float32)
                .at[:, 0:1].set(data["logits_label"])
                .at[:, 1:2].set(data["weights_label"]))
    graph_misc = (jnp.zeros((DATA32_ROWS - D_GMISC, D), jnp.float32)
                  .at[:NUM_GRAPHS, :N_CONS].set(data["sel_cons"])
                  .at[:NUM_GRAPHS, N_CONS:N_CONS + 1].set(data["bias_label"])
                  .at[:NUM_GRAPHS, N_CONS + 1:N_CONS + 2].set(data["degree_label"]))
    data32 = jnp.concatenate([eps_c, eps_v, cons_misc, var_misc, graph_misc], axis=0)
    assert data32.shape == (DATA32_ROWS, D)

    a = data["A"]
    # TODO(synk): at larger graph sizes avoid shipping A_T (use a transposed MXU
    #             operand / dot_general contracting dim 0 and verify no XLU
    #             transpose is reinserted in the MLIR dump).
    return xfeat, a, jnp.transpose(a), data32


# ------------------------------- data build --------------------------------
def build_data(key):
    ks = jax.random.split(key, 4)
    x_cons = jax.random.normal(ks[0], (N_CONS, CONS_FEAT), jnp.float32)
    x_vars = jax.random.normal(ks[1], (N_VARS, VAR_FEAT), jnp.float32)

    graph_of_cons = jnp.repeat(jnp.arange(NUM_GRAPHS), N_CONS // NUM_GRAPHS)
    graph_of_vars = jnp.repeat(jnp.arange(NUM_GRAPHS), N_VARS // NUM_GRAPHS)
    same_graph = graph_of_cons[:, None] == graph_of_vars[None, :]
    conn = jax.random.bernoulli(ks[2], 0.35, (N_CONS, N_VARS)) & same_graph
    edge_w = jax.random.normal(ks[3], (N_CONS, N_VARS), jnp.float32)
    a = jnp.where(conn, edge_w, 0.0).astype(jnp.float32)

    masked_cons_idx = jnp.array([3, 11], dtype=jnp.int32)   # one per graph

    masked_rows = a[masked_cons_idx]                        # [G, V]
    per_var_w = masked_rows[graph_of_vars, jnp.arange(N_VARS)]
    logits_label = (per_var_w != 0.0).astype(jnp.float32)[:, None]   # [V, 1]
    weights_label = per_var_w[:, None]                               # [V, 1]
    bias_label = x_cons[masked_cons_idx, 0:1]                        # [G, 1]
    degree_label = (jnp.sum(masked_rows != 0.0, axis=1, keepdims=True)
                    .astype(jnp.float32) / N_VARS)                   # [G, 1]

    # fixed-shape helpers so the kernel needs no dynamic gathers / A_masked
    row_mask = jnp.zeros((N_CONS, 1), jnp.float32).at[masked_cons_idx].set(1.0)
    sel_cons = (jnp.zeros((NUM_GRAPHS, N_CONS), jnp.float32)
                .at[jnp.arange(NUM_GRAPHS), masked_cons_idx].set(1.0))

    return dict(x_cons=x_cons, x_vars=x_vars, A=a, row_mask=row_mask,
                sel_cons=sel_cons, bias_label=bias_label,
                degree_label=degree_label, logits_label=logits_label,
                weights_label=weights_label)


# ------------------------------- forward ------------------------------------
def g2milp_forward(w32, b32, h64, xfeat, a, a_t, data32, beta_cons, beta_var):
    inputs = (xfeat, a, a_t, data32, w32, b32, h64)
    # TODO(synk): for production graph sizes switch to a node-tiled parallel
    #             grid (C/V blocks "parallel", reduction axis last) and set
    #             vmem_limit_bytes against v7x's 64 MiB VMEM / second TC.
    losses = pl.pallas_call(
        _fused_forward_kernel,
        grid=(1,),
        in_specs=[_vmem_spec(tuple(x.shape)) for x in inputs],
        out_specs=pl.BlockSpec(memory_space=pltpu.MemorySpace.SMEM),
        out_shape=jax.ShapeDtypeStruct((8,), jnp.float32),
        compiler_params=_COMPILER_PARAMS,
    )(*inputs)

    # config.loss_weights.* taken as 1.0; final scalar mixing stays in JAX glue.
    loss = (beta_cons * losses[0] + beta_var * losses[1]
            + losses[2] + losses[3] + losses[4] + losses[5]) / NUM_GRAPHS
    return loss


# --------------------------------- main -------------------------------------
if __name__ == "__main__":
    key = jax.random.PRNGKey(0)
    k_params, k_data, k_eps_c, k_eps_v = jax.random.split(key, 4)

    params = init_params(k_params)
    data = build_data(k_data)
    eps_c = jax.random.normal(k_eps_c, (N_CONS, D), jnp.float32)
    eps_v = jax.random.normal(k_eps_v, (N_VARS, D), jnp.float32)

    # Host-side packing: ~44 tiny kernel arguments collapsed into 7 slabs.
    w32, b32, h64 = pack_params(params)
    xfeat, a, a_t, data32 = pack_data(data, eps_c, eps_v)

    fwd = jax.jit(g2milp_forward)
    loss = fwd(w32, b32, h64, xfeat, a, a_t, data32, 0.5, 0.5)
    loss = jax.block_until_ready(loss)
    assert jnp.isfinite(loss), f"non-finite loss: {loss}"
    print("KERNEL_OK")
</pallas_src>

<mosaic_0001>
module attributes {stable_mosaic.version = 11 : i64} {
  func.func @_fused_forward_kernel(%arg0: i32, %arg1: memref<48x16xf32, #tpu.memory_space<vmem>>, %arg2: memref<16x32xf32, #tpu.memory_space<vmem>>, %arg3: memref<32x16xf32, #tpu.memory_space<vmem>>, %arg4: memref<104x32xf32, #tpu.memory_space<vmem>>, %arg5: memref<480x32xf32, #tpu.memory_space<vmem>>, %arg6: memref<16x32xf32, #tpu.memory_space<vmem>>, %arg7: memref<264x64xf32, #tpu.memory_space<vmem>>, %arg8: memref<8xf32, #tpu.memory_space<smem>>) attributes {dimension_semantics = [#tpu.dimension_semantics<arbitrary>], iteration_bounds = array<i64: 1>, scalar_prefetch = 0 : i64, scratch_operands = 0 : i64, tpu.core_type = #tpu.core_type<tc>, window_params = [{pipeline_mode = #tpu.pipeline_mode<synchronous>, transform_indices = @transform_0, window_bounds = array<i64: 48, 16>}, {pipeline_mode = #tpu.pipeline_mode<synchronous>, transform_indices = @transform_1, window_bounds = array<i64: 16, 32>}, {pipeline_mode = #tpu.pipeline_mode<synchronous>, transform_indices = @transform_2, window_bounds = array<i64: 32, 16>}, {pipeline_mode = #tpu.pipeline_mode<synchronous>, transform_indices = @transform_3, window_bounds = array<i64: 104, 32>}, {pipeline_mode = #tpu.pipeline_mode<synchronous>, transform_indices = @transform_4, window_bounds = array<i64: 480, 32>}, {pipeline_mode = #tpu.pipeline_mode<synchronous>, transform_indices = @transform_5, window_bounds = array<i64: 16, 32>}, {pipeline_mode = #tpu.pipeline_mode<synchronous>, transform_indices = @transform_6, window_bounds = array<i64: 264, 64>}, {transform_indices = @transform_7, window_bounds = array<i64: 8>}]} {
    %c0 = arith.constant 0 : index
    %c0_0 = arith.constant 0 : index
    %0 = vector.load %arg1[%c0, %c0_0] : memref<48x16xf32, #tpu.memory_space<vmem>>, vector<16x16xf32>
    %c16 = arith.constant 16 : index
    %c0_1 = arith.constant 0 : index
    %1 = vector.load %arg1[%c16, %c0_1] : memref<48x16xf32, #tpu.memory_space<vmem>>, vector<32x16xf32>
    %c0_2 = arith.constant 0 : index
    %c0_3 = arith.constant 0 : index
    %2 = vector.load %arg2[%c0_2, %c0_3] : memref<16x32xf32, #tpu.memory_space<vmem>>, vector<16x32xf32>
    %c0_4 = arith.constant 0 : index
    %c0_5 = arith.constant 0 : index
    %3 = vector.load %arg3[%c0_4, %c0_5] : memref<32x16xf32, #tpu.memory_space<vmem>>, vector<32x16xf32>
    %c0_6 = arith.constant 0 : index
    %c0_7 = arith.constant 0 : index
    %4 = vector.load %arg4[%c0_6, %c0_7] : memref<104x32xf32, #tpu.memory_space<vmem>>, vector<16x32xf32>
    %c16_8 = arith.constant 16 : index
    %c0_9 = arith.constant 0 : index
    %5 = vector.load %arg4[%c16_8, %c0_9] : memref<104x32xf32, #tpu.memory_space<vmem>>, vector<32x32xf32>
    %c48 = arith.constant 48 : index
    %c0_10 = arith.constant 0 : index
    %6 = vector.load %arg4[%c48, %c0_10] : memref<104x32xf32, #tpu.memory_space<vmem>>, vector<16x32xf32>
    %c64 = arith.constant 64 : index
    %c0_11 = arith.constant 0 : index
    %7 = vector.load %arg4[%c64, %c0_11] : memref<104x32xf32, #tpu.memory_space<vmem>>, vector<32x32xf32>
    %c96 = arith.constant 96 : index
    %c0_12 = arith.constant 0 : index
    %8 = vector.load %arg4[%c96, %c0_12] : memref<104x32xf32, #tpu.memory_space<vmem>>, vector<2x32xf32>
    %9 = vector.extract_strided_slice %6 {offsets = [0, 0], sizes = [16, 1], strides = [1, 1]} : vector<16x32xf32> to vector<16x1xf32>
    %10 = vector.extract_strided_slice %7 {offsets = [0, 0], sizes = [32, 1], strides = [1, 1]} : vector<32x32xf32> to vector<32x1xf32>
    %11 = vector.extract_strided_slice %7 {offsets = [0, 1], sizes = [32, 1], strides = [1, 1]} : vector<32x32xf32> to vector<32x1xf32>
    %12 = vector.extract_strided_slice %8 {offsets = [0, 0], sizes = [2, 16], strides = [1, 1]} : vector<2x32xf32> to vector<2x16xf32>
    %13 = vector.extract_strided_slice %8 {offsets = [0, 16], sizes = [2, 1], strides = [1, 1]} : vector<2x32xf32> to vector<2x1xf32>
    %14 = vector.extract_strided_slice %8 {offsets = [0, 17], sizes = [2, 1], strides = [1, 1]} : vector<2x32xf32> to vector<2x1xf32>
    %c0_13 = arith.constant 0 : index
    %c0_14 = arith.constant 0 : index
    %15 = vector.load %arg5[%c0_13, %c0_14] : memref<480x32xf32, #tpu.memory_space<vmem>>, vector<16x32xf32>
    %cst = arith.constant dense<0.000000e+00> : vector<16x32xf32>
    %16 = tpu.matmul %0, %15, %cst {dimension_numbers = #tpu.dot_dimension_numbers<[1], [0], [0], [1], [0, 0, 1, 1], [], []>} : vector<16x16xf32>, vector<16x32xf32>, vector<16x32xf32> -> vector<16x32xf32>
    %c0_15 = arith.constant 0 : index
    %c0_16 = arith.constant 0 : index
    %17 = vector.load %arg6[%c0_15, %c0_16] : memref<16x32xf32, #tpu.memory_space<vmem>>, vector<1x32xf32>
    %18 = vector.broadcast %17 : vector<1x32xf32> to vector<16x32xf32>
    %19 = arith.addf %16, %18 : vector<16x32xf32>
    %cst_17 = arith.constant 0.000000e+00 : f32
    %20 = vector.broadcast %cst_17 : f32 to vector<16x32xf32>
    %21 = arith.maximumf %19, %20 : vector<16x32xf32>
    %c32 = arith.constant 32 : index
    %c0_18 = arith.constant 0 : index
    %22 = vector.load %arg5[%c32, %c0_18] : memref<480x32xf32, #tpu.memory_space<vmem>>, vector<32x32xf32>
    %cst_19 = arith.constant dense<0.000000e+00> : vector<16x32xf32>
    %23 = tpu.matmul %21, %22, %cst_19 {dimension_numbers = #tpu.dot_dimension_numbers<[1], [0], [0], [1], [0, 0, 1, 1], [], []>} : vector<16x32xf32>, vector<32x32xf32>, vector<16x32xf32> -> vector<16x32xf32>
    %c1 = arith.constant 1 : index
    %c0_20 = arith.constant 0 : index
    %24 = vector.load %arg6[%c1, %c0_20] : memref<16x32xf32, #tpu.memory_space<vmem>>, vector<1x32xf32>
    %25 = vector.broadcast %24 : vector<1x32xf32> to vector<16x32xf32>
    %26 = arith.addf %23, %25 : vector<16x32xf32>
    %c16_21 = arith.constant 16 : index
    %c0_22 = arith.constant 0 : index
    %27 = vector.load %arg5[%c16_21, %c0_22] : memref<480x32xf32, #tpu.memory_space<vmem>>, vector<16x32xf32>
    %cst_23 = arith.constant dense<0.000000e+00> : vector<32x32xf32>
    %28 = tpu.matmul %1, %27, %cst_23 {dimension_numbers = #tpu.dot_dimension_numbers<[1], [0], [0], [1], [0, 0, 1, 1], [], []>} : vector<32x16xf32>, vector<16x32xf32>, vector<32x32xf32> -> vector<32x32xf32>
    %c2 = arith.constant 2 : index
    %c0_24 = arith.constant 0 : index
    %29 = vector.load %arg6[%c2, %c0_24] : memref<16x32xf32, #tpu.memory_space<vmem>>, vector<1x32xf32>
    %30 = vector.broadcast %29 : vector<1x32xf32> to vector<32x32xf32>
    %31 = arith.addf %28, %30 : vector<32x32xf32>
    %cst_25 = arith.constant 0.000000e+00 : f32
    %32 = vector.broadcast %cst_25 : f32 to vector<32x32xf32>
    %33 = arith.maximumf %31, %32 : vector<32x32xf32>
    %c64_26 = arith.constant 64 : index
    %c0_27 = arith.constant 0 : index
    %34 = vector.load %arg5[%c64_26, %c0_27] : memref<480x32xf32, #tpu.memory_space<vmem>>, vector<32x32xf32>
    %cst_28 = arith.constant dense<0.000000e+00> : vector<32x32xf32>
    %35 = tpu.matmul %33, %34, %cst_28 {dimension_numbers = #tpu.dot_dimension_numbers<[1], [0], [0], [1], [0, 0, 1, 1], [], []>} : vector<32x32xf32>, vector<32x32xf32>, vector<32x32xf32> -> vector<32x32xf32>
    %c3 = arith.constant 3 : index
    %c0_29 = arith.constant 0 : index
    %36 = vector.load %arg6[%c3, %c0_29] : memref<16x32xf32, #tpu.memory_space<vmem>>, vector<1x32xf32>
    %37 = vector.broadcast %36 : vector<1x32xf32> to vector<32x32xf32>
    %38 = arith.addf %35, %37 : vector<32x32xf32>
    %cst_30 = arith.constant dense<0.000000e+00> : vector<32x32xf32>
    %39 = tpu.matmul %3, %26, %cst_30 {dimension_numbers = #tpu.dot_dimension_numbers<[1], [0], [0], [1], [0, 0, 1, 1], [], []>} : vector<32x16xf32>, vector<16x32xf32>, vector<32x32xf32> -> vector<32x32xf32>
    %c96_31 = arith.constant 96 : index
    %c0_32 = arith.constant 0 : index
    %40 = vector.load %arg5[%c96_31, %c0_32] : memref<480x32xf32, #tpu.memory_space<vmem>>, vector<32x32xf32>
    %cst_33 = arith.constant dense<0.000000e+00> : vector<32x32xf32>
    %41 = tpu.matmul %38, %40, %cst_33 {dimension_numbers = #tpu.dot_dimension_numbers<[1], [0], [0], [1], [0, 0, 1, 1], [], []>} : vector<32x32xf32>, vector<32x32xf32>, vector<32x32xf32> -> vector<32x32xf32>
    %c128 = arith.constant 128 : index
    %c0_34 = arith.constant 0 : index
    %42 = vector.load %arg5[%c128, %c0_34] : memref<480x32xf32, #tpu.memory_space<vmem>>, vector<32x32xf32>
    %cst_35 = arith.constant dense<0.000000e+00> : vector<32x32xf32>
    %43 = tpu.matmul %39, %42, %cst_35 {dimension_numbers = #tpu.dot_dimension_numbers<[1], [0], [0], [1], [0, 0, 1, 1], [], []>} : vector<32x32xf32>, vector<32x32xf32>, vector<32x32xf32> -> vector<32x32xf32>
    %44 = arith.addf %41, %43 : vector<32x32xf32>
    %c4 = arith.constant 4 : index
    %c0_36 = arith.constant 0 : index
    %45 = vector.load %arg6[%c4, %c0_36] : memref<16x32xf32, #tpu.memory_space<vmem>>, vector<1x32xf32>
    %46 = vector.broadcast %45 : vector<1x32xf32> to vector<32x32xf32>
    %47 = arith.addf %44, %46 : vector<32x32xf32>
    %cst_37 = arith.constant 0.000000e+00 : f32
    %48 = vector.broadcast %cst_37 : f32 to vector<32x32xf32>
    %49 = arith.maximumf %47, %48 : vector<32x32xf32>
    %cst_38 = arith.constant dense<0.000000e+00> : vector<16x32xf32>
    %50 = tpu.matmul %2, %49, %cst_38 {dimension_numbers = #tpu.dot_dimension_numbers<[1], [0], [0], [1], [0, 0, 1, 1], [], []>} : vector<16x32xf32>, vector<32x32xf32>, vector<16x32xf32> -> vector<16x32xf32>
    %c160 = arith.constant 160 : index
    %c0_39 = arith.constant 0 : index
    %51 = vector.load %arg5[%c160, %c0_39] : memref<480x32xf32, #tpu.memory_space<vmem>>, vector<32x32xf32>
    %cst_40 = arith.constant dense<0.000000e+00> : vector<16x32xf32>
    %52 = tpu.matmul %26, %51, %cst_40 {dimension_numbers = #tpu.dot_dimension_numbers<[1], [0], [0], [1], [0, 0, 1, 1], [], []>} : vector<16x32xf32>, vector<32x32xf32>, vector<16x32xf32> -> vector<16x32xf32>
    %c192 = arith.constant 192 : index
    %c0_41 = arith.constant 0 : index
    %53 = vector.load %arg5[%c192, %c0_41] : memref<480x32xf32, #tpu.memory_space<vmem>>, vector<32x32xf32>
    %cst_42 = arith.constant dense<0.000000e+00> : vector<16x32xf32>
    %54 = tpu.matmul %50, %53, %cst_42 {dimension_numbers = #tpu.dot_dimension_numbers<[1], [0], [0], [1], [0, 0, 1, 1], [], []>} : vector<16x32xf32>, vector<32x32xf32>, vector<16x32xf32> -> vector<16x32xf32>
    %55 = arith.addf %52, %54 : vector<16x32xf32>
    %c5 = arith.constant 5 : index
    %c0_43 = arith.constant 0 : index
    %56 = vector.load %arg6[%c5, %c0_43] : memref<16x32xf32, #tpu.memory_space<vmem>>, vector<1x32xf32>
    %57 = vector.broadcast %56 : vector<1x32xf32> to vector<16x32xf32>
    %58 = arith.addf %55, %57 : vector<16x32xf32>
    %cst_44 = arith.constant 0.000000e+00 : f32
    %59 = vector.broadcast %cst_44 : f32 to vector<16x32xf32>
    %60 = arith.maximumf %58, %59 : vector<16x32xf32>
    %c352 = arith.constant 352 : index
    %c0_45 = arith.constant 0 : index
    %61 = vector.load %arg5[%c352, %c0_45] : memref<480x32xf32, #tpu.memory_space<vmem>>, vector<32x32xf32>
    %c8 = arith.constant 8 : index
    %c0_46 = arith.constant 0 : index
    %62 = vector.load %arg6[%c8, %c0_46] : memref<16x32xf32, #tpu.memory_space<vmem>>, vector<1x32xf32>
    %c384 = arith.constant 384 : index
    %c0_47 = arith.constant 0 : index
    %63 = vector.load %arg5[%c384, %c0_47] : memref<480x32xf32, #tpu.memory_space<vmem>>, vector<32x32xf32>
    %c9 = arith.constant 9 : index
    %c0_48 = arith.constant 0 : index
    %64 = vector.load %arg6[%c9, %c0_48] : memref<16x32xf32, #tpu.memory_space<vmem>>, vector<1x32xf32>
    %cst_49 = arith.constant dense<0.000000e+00> : vector<16x32xf32>
    %65 = tpu.matmul %60, %61, %cst_49 {dimension_numbers = #tpu.dot_dimension_numbers<[1], [0], [0], [1], [0, 0, 1, 1], [], []>} : vector<16x32xf32>, vector<32x32xf32>, vector<16x32xf32> -> vector<16x32xf32>
    %66 = vector.broadcast %62 : vector<1x32xf32> to vector<16x32xf32>
    %67 = arith.addf %65, %66 : vector<16x32xf32>
    %cst_50 = arith.constant dense<0.000000e+00> : vector<16x32xf32>
    %68 = tpu.matmul %60, %63, %cst_50 {dimension_numbers = #tpu.dot_dimension_numbers<[1], [0], [0], [1], [0, 0, 1, 1], [], []>} : vector<16x32xf32>, vector<32x32xf32>, vector<16x32xf32> -> vector<16x32xf32>
    %69 = vector.broadcast %64 : vector<1x32xf32> to vector<16x32xf32>
    %70 = arith.addf %68, %69 : vector<16x32xf32>
    %cst_51 = arith.constant 5.000000e-01 : f32
    %71 = vector.broadcast %cst_51 : f32 to vector<16x32xf32>
    %72 = arith.mulf %71, %70 : vector<16x32xf32>
    %73 = math.exp %72 : vector<16x32xf32>
    %74 = arith.mulf %73, %4 : vector<16x32xf32>
    %75 = arith.addf %67, %74 : vector<16x32xf32>
    %cst_52 = arith.constant 1.000000e+00 : f32
    %76 = vector.broadcast %cst_52 : f32 to vector<16x32xf32>
    %77 = arith.addf %76, %70 : vector<16x32xf32>
    %78 = arith.mulf %67, %67 : vector<16x32xf32>
    %79 = arith.subf %77, %78 : vector<16x32xf32>
    %80 = arith.mulf %73, %73 : vector<16x32xf32>
    %81 = arith.subf %79, %80 : vector<16x32xf32>
    %82 = vector.shape_cast %81 : vector<16x32xf32> to vector<1x16x32xf32>
    %cst_53 = arith.constant dense<0.000000e+00> : vector<1xf32>
    %83 = vector.multi_reduction <add>, %82, %cst_53 [1, 2] : vector<1x16x32xf32> to vector<1xf32>
    %84 = vector.shape_cast %83 : vector<1xf32> to vector<1x1x1xf32>
    %85 = vector.extract %84[0, 0, 0] : f32 from vector<1x1x1xf32>
    %cst_54 = arith.constant -5.000000e-01 : f32
    %86 = arith.mulf %cst_54, %85 : f32
    %cst_55 = arith.constant 1.600000e+01 : f32
    %87 = arith.divf %86, %cst_55 : f32
    %c416 = arith.constant 416 : index
    %c0_56 = arith.constant 0 : index
    %88 = vector.load %arg5[%c416, %c0_56] : memref<480x32xf32, #tpu.memory_space<vmem>>, vector<32x32xf32>
    %c10 = arith.constant 10 : index
    %c0_57 = arith.constant 0 : index
    %89 = vector.load %arg6[%c10, %c0_57] : memref<16x32xf32, #tpu.memory_space<vmem>>, vector<1x32xf32>
    %c448 = arith.constant 448 : index
    %c0_58 = arith.constant 0 : index
    %90 = vector.load %arg5[%c448, %c0_58] : memref<480x32xf32, #tpu.memory_space<vmem>>, vector<32x32xf32>
    %c11 = arith.constant 11 : index
    %c0_59 = arith.constant 0 : index
    %91 = vector.load %arg6[%c11, %c0_59] : memref<16x32xf32, #tpu.memory_space<vmem>>, vector<1x32xf32>
    %cst_60 = arith.constant dense<0.000000e+00> : vector<32x32xf32>
    %92 = tpu.matmul %49, %88, %cst_60 {dimension_numbers = #tpu.dot_dimension_numbers<[1], [0], [0], [1], [0, 0, 1, 1], [], []>} : vector<32x32xf32>, vector<32x32xf32>, vector<32x32xf32> -> vector<32x32xf32>
    %93 = vector.broadcast %89 : vector<1x32xf32> to vector<32x32xf32>
    %94 = arith.addf %92, %93 : vector<32x32xf32>
    %cst_61 = arith.constant dense<0.000000e+00> : vector<32x32xf32>
    %95 = tpu.matmul %49, %90, %cst_61 {dimension_numbers = #tpu.dot_dimension_numbers<[1], [0], [0], [1], [0, 0, 1, 1], [], []>} : vector<32x32xf32>, vector<32x32xf32>, vector<32x32xf32> -> vector<32x32xf32>
    %96 = vector.broadcast %91 : vector<1x32xf32> to vector<32x32xf32>
    %97 = arith.addf %95, %96 : vector<32x32xf32>
    %cst_62 = arith.constant 5.000000e-01 : f32
    %98 = vector.broadcast %cst_62 : f32 to vector<32x32xf32>
    %99 = arith.mulf %98, %97 : vector<32x32xf32>
    %100 = math.exp %99 : vector<32x32xf32>
    %101 = arith.mulf %100, %5 : vector<32x32xf32>
    %102 = arith.addf %94, %101 : vector<32x32xf32>
    %cst_63 = arith.constant 1.000000e+00 : f32
    %103 = vector.broadcast %cst_63 : f32 to vector<32x32xf32>
    %104 = arith.addf %103, %97 : vector<32x32xf32>
    %105 = arith.mulf %94, %94 : vector<32x32xf32>
    %106 = arith.subf %104, %105 : vector<32x32xf32>
    %107 = arith.mulf %100, %100 : vector<32x32xf32>
    %108 = arith.subf %106, %107 : vector<32x32xf32>
    %109 = vector.shape_cast %108 : vector<32x32xf32> to vector<1x32x32xf32>
    %cst_64 = arith.constant dense<0.000000e+00> : vector<1xf32>
    %110 = vector.multi_reduction <add>, %109, %cst_64 [1, 2] : vector<1x32x32xf32> to vector<1xf32>
    %111 = vector.shape_cast %110 : vector<1xf32> to vector<1x1x1xf32>
    %112 = vector.extract %111[0, 0, 0] : f32 from vector<1x1x1xf32>
    %cst_65 = arith.constant -5.000000e-01 : f32
    %113 = arith.mulf %cst_65, %112 : f32
    %cst_66 = arith.constant 3.200000e+01 : f32
    %114 = arith.divf %113, %cst_66 : f32
    %cst_67 = arith.constant 1.000000e+00 : f32
    %115 = vector.broadcast %cst_67 : f32 to vector<16x1xf32>
    %116 = arith.subf %115, %9 : vector<16x1xf32>
    %cst_68 = arith.constant 0.000000e+00 : f32
    %117 = vector.broadcast %cst_68 : f32 to vector<16x1xf32>
    %118 = arith.cmpf ogt, %9, %117 : vector<16x1xf32>
    %c12 = arith.constant 12 : index
    %c0_69 = arith.constant 0 : index
    %119 = vector.load %arg6[%c12, %c0_69] : memref<16x32xf32, #tpu.memory_space<vmem>>, vector<1x32xf32>
    %120 = vector.shape_cast %118 : vector<16x1xi1> to vector<16x1xi1>
    %121 = vector.broadcast %120 : vector<16x1xi1> to vector<16x32xi1>
    %122 = vector.shape_cast %119 : vector<1x32xf32> to vector<1x32xf32>
    %123 = vector.broadcast %122 : vector<1x32xf32> to vector<16x32xf32>
    %124 = arith.select %121, %123, %26 : vector<16x32xi1>, vector<16x32xf32>
    %125 = vector.broadcast %116 : vector<16x1xf32> to vector<16x32xf32>
    %126 = arith.mulf %124, %125 : vector<16x32xf32>
    %cst_70 = arith.constant dense<0.000000e+00> : vector<32x32xf32>
    %127 = tpu.matmul %3, %126, %cst_70 {dimension_numbers = #tpu.dot_dimension_numbers<[1], [0], [0], [1], [0, 0, 1, 1], [], []>} : vector<32x16xf32>, vector<16x32xf32>, vector<32x32xf32> -> vector<32x32xf32>
    %c224 = arith.constant 224 : index
    %c0_71 = arith.constant 0 : index
    %128 = vector.load %arg5[%c224, %c0_71] : memref<480x32xf32, #tpu.memory_space<vmem>>, vector<32x32xf32>
    %cst_72 = arith.constant dense<0.000000e+00> : vector<32x32xf32>
    %129 = tpu.matmul %38, %128, %cst_72 {dimension_numbers = #tpu.dot_dimension_numbers<[1], [0], [0], [1], [0, 0, 1, 1], [], []>} : vector<32x32xf32>, vector<32x32xf32>, vector<32x32xf32> -> vector<32x32xf32>
    %c256 = arith.constant 256 : index
    %c0_73 = arith.constant 0 : index
    %130 = vector.load %arg5[%c256, %c0_73] : memref<480x32xf32, #tpu.memory_space<vmem>>, vector<32x32xf32>
    %cst_74 = arith.constant dense<0.000000e+00> : vector<32x32xf32>
    %131 = tpu.matmul %127, %130, %cst_74 {dimension_numbers = #tpu.dot_dimension_numbers<[1], [0], [0], [1], [0, 0, 1, 1], [], []>} : vector<32x32xf32>, vector<32x32xf32>, vector<32x32xf32> -> vector<32x32xf32>
    %132 = arith.addf %129, %131 : vector<32x32xf32>
    %c6 = arith.constant 6 : index
    %c0_75 = arith.constant 0 : index
    %133 = vector.load %arg6[%c6, %c0_75] : memref<16x32xf32, #tpu.memory_space<vmem>>, vector<1x32xf32>
    %134 = vector.broadcast %133 : vector<1x32xf32> to vector<32x32xf32>
    %135 = arith.addf %132, %134 : vector<32x32xf32>
    %cst_76 = arith.constant 0.000000e+00 : f32
    %136 = vector.broadcast %cst_76 : f32 to vector<32x32xf32>
    %137 = arith.maximumf %135, %136 : vector<32x32xf32>
    %cst_77 = arith.constant dense<0.000000e+00> : vector<16x32xf32>
    %138 = tpu.matmul %2, %137, %cst_77 {dimension_numbers = #tpu.dot_dimension_numbers<[1], [0], [0], [1], [0, 0, 1, 1], [], []>} : vector<16x32xf32>, vector<32x32xf32>, vector<16x32xf32> -> vector<16x32xf32>
    %139 = vector.broadcast %116 : vector<16x1xf32> to vector<16x32xf32>
    %140 = arith.mulf %138, %139 : vector<16x32xf32>
    %c288 = arith.constant 288 : index
    %c0_78 = arith.constant 0 : index
    %141 = vector.load %arg5[%c288, %c0_78] : memref<480x32xf32, #tpu.memory_space<vmem>>, vector<32x32xf32>
    %cst_79 = arith.constant dense<0.000000e+00> : vector<16x32xf32>
    %142 = tpu.matmul %124, %141, %cst_79 {dimension_numbers = #tpu.dot_dimension_numbers<[1], [0], [0], [1], [0, 0, 1, 1], [], []>} : vector<16x32xf32>, vector<32x32xf32>, vector<16x32xf32> -> vector<16x32xf32>
    %c320 = arith.constant 320 : index
    %c0_80 = arith.constant 0 : index
    %143 = vector.load %arg5[%c320, %c0_80] : memref<480x32xf32, #tpu.memory_space<vmem>>, vector<32x32xf32>
    %cst_81 = arith.constant dense<0.000000e+00> : vector<16x32xf32>
    %144 = tpu.matmul %140, %143, %cst_81 {dimension_numbers = #tpu.dot_dimension_numbers<[1], [0], [0], [1], [0, 0, 1, 1], [], []>} : vector<16x32xf32>, vector<32x32xf32>, vector<16x32xf32> -> vector<16x32xf32>
    %145 = arith.addf %142, %144 : vector<16x32xf32>
    %c7 = arith.constant 7 : index
    %c0_82 = arith.constant 0 : index
    %146 = vector.load %arg6[%c7, %c0_82] : memref<16x32xf32, #tpu.memory_space<vmem>>, vector<1x32xf32>
    %147 = vector.broadcast %146 : vector<1x32xf32> to vector<16x32xf32>
    %148 = arith.addf %145, %147 : vector<16x32xf32>
    %cst_83 = arith.constant 0.000000e+00 : f32
    %149 = vector.broadcast %cst_83 : f32 to vector<16x32xf32>
    %150 = arith.maximumf %148, %149 : vector<16x32xf32>
    %cst_84 = arith.constant dense<0.000000e+00> : vector<2x32xf32>
    %151 = tpu.matmul %12, %75, %cst_84 {dimension_numbers = #tpu.dot_dimension_numbers<[1], [0], [0], [1], [0, 0, 1, 1], [], []>} : vector<2x16xf32>, vector<16x32xf32>, vector<2x32xf32> -> vector<2x32xf32>
    %cst_85 = arith.constant dense<0.000000e+00> : vector<2x32xf32>
    %152 = tpu.matmul %12, %150, %cst_85 {dimension_numbers = #tpu.dot_dimension_numbers<[1], [0], [0], [1], [0, 0, 1, 1], [], []>} : vector<2x16xf32>, vector<16x32xf32>, vector<2x32xf32> -> vector<2x32xf32>
    %c0_86 = arith.constant 0 : index
    %c0_87 = arith.constant 0 : index
    %153 = vector.load %arg7[%c0_86, %c0_87] : memref<264x64xf32, #tpu.memory_space<vmem>>, vector<32x64xf32>
    %cst_88 = arith.constant dense<0.000000e+00> : vector<2x64xf32>
    %154 = tpu.matmul %151, %153, %cst_88 {dimension_numbers = #tpu.dot_dimension_numbers<[1], [0], [0], [1], [0, 0, 1, 1], [], []>} : vector<2x32xf32>, vector<32x64xf32>, vector<2x64xf32> -> vector<2x64xf32>
    %c32_89 = arith.constant 32 : index
    %c0_90 = arith.constant 0 : index
    %155 = vector.load %arg7[%c32_89, %c0_90] : memref<264x64xf32, #tpu.memory_space<vmem>>, vector<32x64xf32>
    %cst_91 = arith.constant dense<0.000000e+00> : vector<2x64xf32>
    %156 = tpu.matmul %152, %155, %cst_91 {dimension_numbers = #tpu.dot_dimension_numbers<[1], [0], [0], [1], [0, 0, 1, 1], [], []>} : vector<2x32xf32>, vector<32x64xf32>, vector<2x64xf32> -> vector<2x64xf32>
    %157 = arith.addf %154, %156 : vector<2x64xf32>
    %c256_92 = arith.constant 256 : index
    %c0_93 = arith.constant 0 : index
    %158 = vector.load %arg7[%c256_92, %c0_93] : memref<264x64xf32, #tpu.memory_space<vmem>>, vector<1x64xf32>
    %159 = vector.broadcast %158 : vector<1x64xf32> to vector<2x64xf32>
    %160 = arith.addf %157, %159 : vector<2x64xf32>
    %cst_94 = arith.constant 0.000000e+00 : f32
    %161 = vector.broadcast %cst_94 : f32 to vector<2x64xf32>
    %162 = arith.maximumf %160, %161 : vector<2x64xf32>
    %c128_95 = arith.constant 128 : index
    %c0_96 = arith.constant 0 : index
    %163 = vector.load %arg7[%c128_95, %c0_96] : memref<264x64xf32, #tpu.memory_space<vmem>>, vector<64x64xf32>
    %cst_97 = arith.constant dense<0.000000e+00> : vector<2x64xf32>
    %164 = tpu.matmul %162, %163, %cst_97 {dimension_numbers = #tpu.dot_dimension_numbers<[1], [0], [0], [1], [0, 0, 1, 1], [], []>} : vector<2x64xf32>, vector<64x64xf32>, vector<2x64xf32> -> vector<2x64xf32>
    %c258 = arith.constant 258 : index
    %c0_98 = arith.constant 0 : index
    %165 = vector.load %arg7[%c258, %c0_98] : memref<264x64xf32, #tpu.memory_space<vmem>>, vector<1x64xf32>
    %166 = vector.broadcast %165 : vector<1x64xf32> to vector<2x64xf32>
    %167 = arith.addf %164, %166 : vector<2x64xf32>
    %168 = vector.extract_strided_slice %167 {offsets = [0, 0], sizes = [2, 1], strides = [1, 1]} : vector<2x64xf32> to vector<2x1xf32>
    %169 = vector.extract_strided_slice %167 {offsets = [0, 1], sizes = [2, 1], strides = [1, 1]} : vector<2x64xf32> to vector<2x1xf32>
    %170 = arith.subf %168, %13 : vector<2x1xf32>
    %171 = arith.mulf %170, %170 : vector<2x1xf32>
    %172 = vector.shape_cast %171 : vector<2x1xf32> to vector<1x2x1xf32>
    %cst_99 = arith.constant dense<0.000000e+00> : vector<1xf32>
    %173 = vector.multi_reduction <add>, %172, %cst_99 [1, 2] : vector<1x2x1xf32> to vector<1xf32>
    %174 = vector.shape_cast %173 : vector<1xf32> to vector<1x1x1xf32>
    %175 = vector.extract %174[0, 0, 0] : f32 from vector<1x1x1xf32>
    %cst_100 = arith.constant 2.000000e+00 : f32
    %176 = arith.divf %175, %cst_100 : f32
    %177 = arith.subf %169, %14 : vector<2x1xf32>
    %178 = arith.mulf %177, %177 : vector<2x1xf32>
    %179 = vector.shape_cast %178 : vector<2x1xf32> to vector<1x2x1xf32>
    %cst_101 = arith.constant dense<0.000000e+00> : vector<1xf32>
    %180 = vector.multi_reduction <add>, %179, %cst_101 [1, 2] : vector<1x2x1xf32> to vector<1xf32>
    %181 = vector.shape_cast %180 : vector<1xf32> to vector<1x1x1xf32>
    %182 = vector.extract %181[0, 0, 0] : f32 from vector<1x1x1xf32>
    %cst_102 = arith.constant 2.000000e+00 : f32
    %183 = arith.divf %182, %cst_102 : f32
    %c64_103 = arith.constant 64 : index
    %c0_104 = arith.constant 0 : index
    %184 = vector.load %arg7[%c64_103, %c0_104] : memref<264x64xf32, #tpu.memory_space<vmem>>, vector<32x64xf32>
    %cst_105 = arith.constant dense<0.000000e+00> : vector<32x64xf32>
    %185 = tpu.matmul %102, %184, %cst_105 {dimension_numbers = #tpu.dot_dimension_numbers<[1], [0], [0], [1], [0, 0, 1, 1], [], []>} : vector<32x32xf32>, vector<32x64xf32>, vector<32x64xf32> -> vector<32x64xf32>
    %c96_106 = arith.constant 96 : index
    %c0_107 = arith.constant 0 : index
    %186 = vector.load %arg7[%c96_106, %c0_107] : memref<264x64xf32, #tpu.memory_space<vmem>>, vector<32x64xf32>
    %cst_108 = arith.constant dense<0.000000e+00> : vector<32x64xf32>
    %187 = tpu.matmul %137, %186, %cst_108 {dimension_numbers = #tpu.dot_dimension_numbers<[1], [0], [0], [1], [0, 0, 1, 1], [], []>} : vector<32x32xf32>, vector<32x64xf32>, vector<32x64xf32> -> vector<32x64xf32>
    %188 = arith.addf %185, %187 : vector<32x64xf32>
    %c257 = arith.constant 257 : index
    %c0_109 = arith.constant 0 : index
    %189 = vector.load %arg7[%c257, %c0_109] : memref<264x64xf32, #tpu.memory_space<vmem>>, vector<1x64xf32>
    %190 = vector.broadcast %189 : vector<1x64xf32> to vector<32x64xf32>
    %191 = arith.addf %188, %190 : vector<32x64xf32>
    %cst_110 = arith.constant 0.000000e+00 : f32
    %192 = vector.broadcast %cst_110 : f32 to vector<32x64xf32>
    %193 = arith.maximumf %191, %192 : vector<32x64xf32>
    %c192_111 = arith.constant 192 : index
    %c0_112 = arith.constant 0 : index
    %194 = vector.load %arg7[%c192_111, %c0_112] : memref<264x64xf32, #tpu.memory_space<vmem>>, vector<64x64xf32>
    %cst_113 = arith.constant dense<0.000000e+00> : vector<32x64xf32>
    %195 = tpu.matmul %193, %194, %cst_113 {dimension_numbers = #tpu.dot_dimension_numbers<[1], [0], [0], [1], [0, 0, 1, 1], [], []>} : vector<32x64xf32>, vector<64x64xf32>, vector<32x64xf32> -> vector<32x64xf32>
    %c259 = arith.constant 259 : index
    %c0_114 = arith.constant 0 : index
    %196 = vector.load %arg7[%c259, %c0_114] : memref<264x64xf32, #tpu.memory_space<vmem>>, vector<1x64xf32>
    %197 = vector.broadcast %196 : vector<1x64xf32> to vector<32x64xf32>
    %198 = arith.addf %195, %197 : vector<32x64xf32>
    %199 = vector.extract_strided_slice %198 {offsets = [0, 0], sizes = [32, 1], strides = [1, 1]} : vector<32x64xf32> to vector<32x1xf32>
    %200 = vector.extract_strided_slice %198 {offsets = [0, 1], sizes = [32, 1], strides = [1, 1]} : vector<32x64xf32> to vector<32x1xf32>
    %cst_115 = arith.constant 0.000000e+00 : f32
    %201 = vector.broadcast %cst_115 : f32 to vector<32x1xf32>
    %202 = arith.maximumf %199, %201 : vector<32x1xf32>
    %203 = arith.mulf %199, %10 : vector<32x1xf32>
    %204 = arith.subf %202, %203 : vector<32x1xf32>
    %205 = math.absf %199 : vector<32x1xf32>
    %cst_116 = arith.constant 0.000000e+00 : f32
    %206 = vector.broadcast %cst_116 : f32 to vector<32x1xf32>
    %207 = arith.subf %206, %205 : vector<32x1xf32>
    %208 = math.exp %207 : vector<32x1xf32>
    %cst_117 = arith.constant 1.000000e+00 : f32
    %209 = vector.broadcast %cst_117 : f32 to vector<32x1xf32>
    %210 = arith.addf %209, %208 : vector<32x1xf32>
    %211 = math.log %210 : vector<32x1xf32>
    %212 = arith.addf %204, %211 : vector<32x1xf32>
    %213 = vector.shape_cast %212 : vector<32x1xf32> to vector<1x32x1xf32>
    %cst_118 = arith.constant dense<0.000000e+00> : vector<1xf32>
    %214 = vector.multi_reduction <add>, %213, %cst_118 [1, 2] : vector<1x32x1xf32> to vector<1xf32>
    %215 = vector.shape_cast %214 : vector<1xf32> to vector<1x1x1xf32>
    %216 = vector.extract %215[0, 0, 0] : f32 from vector<1x1x1xf32>
    %cst_119 = arith.constant 3.200000e+01 : f32
    %217 = arith.divf %216, %cst_119 : f32
    %218 = vector.shape_cast %10 : vector<32x1xf32> to vector<1x32x1xf32>
    %cst_120 = arith.constant dense<0.000000e+00> : vector<1xf32>
    %219 = vector.multi_reduction <add>, %218, %cst_120 [1, 2] : vector<1x32x1xf32> to vector<1xf32>
    %220 = vector.shape_cast %219 : vector<1xf32> to vector<1x1x1xf32>
    %221 = vector.extract %220[0, 0, 0] : f32 from vector<1x1x1xf32>
    %cst_121 = arith.constant 1.000000e+00 : f32
    %222 = arith.maximumf %221, %cst_121 : f32
    %223 = arith.subf %200, %11 : vector<32x1xf32>
    %224 = arith.mulf %223, %223 : vector<32x1xf32>
    %225 = arith.mulf %224, %10 : vector<32x1xf32>
    %226 = vector.shape_cast %225 : vector<32x1xf32> to vector<1x32x1xf32>
    %cst_122 = arith.constant dense<0.000000e+00> : vector<1xf32>
    %227 = vector.multi_reduction <add>, %226, %cst_122 [1, 2] : vector<1x32x1xf32> to vector<1xf32>
    %228 = vector.shape_cast %227 : vector<1xf32> to vector<1x1x1xf32>
    %229 = vector.extract %228[0, 0, 0] : f32 from vector<1x1x1xf32>
    %230 = arith.divf %229, %222 : f32
    %c0_123 = arith.constant 0 : index
    %231 = memref.load %arg8[%c0_123] : memref<8xf32, #tpu.memory_space<smem>>
    memref.store %87, %arg8[%c0_123] : memref<8xf32, #tpu.memory_space<smem>>
    %c1_124 = arith.constant 1 : index
    %232 = memref.load %arg8[%c1_124] : memref<8xf32, #tpu.memory_space<smem>>
    memref.store %114, %arg8[%c1_124] : memref<8xf32, #tpu.memory_space<smem>>
    %c2_125 = arith.constant 2 : index
    %233 = memref.load %arg8[%c2_125] : memref<8xf32, #tpu.memory_space<smem>>
    memref.store %176, %arg8[%c2_125] : memref<8xf32, #tpu.memory_space<smem>>
    %c3_126 = arith.constant 3 : index
    %234 = memref.load %arg8[%c3_126] : memref<8xf32, #tpu.memory_space<smem>>
    memref.store %183, %arg8[%c3_126] : memref<8xf32, #tpu.memory_space<smem>>
    %c4_127 = arith.constant 4 : index
    %235 = memref.load %arg8[%c4_127] : memref<8xf32, #tpu.memory_space<smem>>
    memref.store %217, %arg8[%c4_127] : memref<8xf32, #tpu.memory_space<smem>>
    %c5_128 = arith.constant 5 : index
    %236 = memref.load %arg8[%c5_128] : memref<8xf32, #tpu.memory_space<smem>>
    memref.store %230, %arg8[%c5_128] : memref<8xf32, #tpu.memory_space<smem>>
    %cst_129 = arith.constant 0.000000e+00 : f32
    %c6_130 = arith.constant 6 : index
    %237 = memref.load %arg8[%c6_130] : memref<8xf32, #tpu.memory_space<smem>>
    memref.store %cst_129, %arg8[%c6_130] : memref<8xf32, #tpu.memory_space<smem>>
    %cst_131 = arith.constant 0.000000e+00 : f32
    %c7_132 = arith.constant 7 : index
    %238 = memref.load %arg8[%c7_132] : memref<8xf32, #tpu.memory_space<smem>>
    memref.store %cst_131, %arg8[%c7_132] : memref<8xf32, #tpu.memory_space<smem>>
    return
  }
  func.func @transform_0(%arg0: i32) -> (i32, i32) {
    %c0_i32 = arith.constant 0 : i32
    %c0_i32_0 = arith.constant 0 : i32
    %c0_i32_1 = arith.constant 0 : i32
    return %c0_i32, %c0_i32_0 : i32, i32
  }
  func.func @transform_1(%arg0: i32) -> (i32, i32) {
    %c0_i32 = arith.constant 0 : i32
    %c0_i32_0 = arith.constant 0 : i32
    %c0_i32_1 = arith.constant 0 : i32
    return %c0_i32, %c0_i32_0 : i32, i32
  }
  func.func @transform_2(%arg0: i32) -> (i32, i32) {
    %c0_i32 = arith.constant 0 : i32
    %c0_i32_0 = arith.constant 0 : i32
    %c0_i32_1 = arith.constant 0 : i32
    return %c0_i32, %c0_i32_0 : i32, i32
  }
  func.func @transform_3(%arg0: i32) -> (i32, i32) {
    %c0_i32 = arith.constant 0 : i32
    %c0_i32_0 = arith.constant 0 : i32
    %c0_i32_1 = arith.constant 0 : i32
    return %c0_i32, %c0_i32_0 : i32, i32
  }
  func.func @transform_4(%arg0: i32) -> (i32, i32) {
    %c0_i32 = arith.constant 0 : i32
    %c0_i32_0 = arith.constant 0 : i32
    %c0_i32_1 = arith.constant 0 : i32
    return %c0_i32, %c0_i32_0 : i32, i32
  }
  func.func @transform_5(%arg0: i32) -> (i32, i32) {
    %c0_i32 = arith.constant 0 : i32
    %c0_i32_0 = arith.constant 0 : i32
    %c0_i32_1 = arith.constant 0 : i32
    return %c0_i32, %c0_i32_0 : i32, i32
  }
  func.func @transform_6(%arg0: i32) -> (i32, i32) {
    %c0_i32 = arith.constant 0 : i32
    %c0_i32_0 = arith.constant 0 : i32
    %c0_i32_1 = arith.constant 0 : i32
    return %c0_i32, %c0_i32_0 : i32, i32
  }
  func.func @transform_7(%arg0: i32) -> i32 {
    %c0_i32 = arith.constant 0 : i32
    %c0_i32_0 = arith.constant 0 : i32
    return %c0_i32 : i32
  }
}

</mosaic_0001>

<bundles_post_ra>
// kernel: g2milp_forward.1
= control target key start
LH: loop header
LB: loop body
LE: loop exit
PB: predicated region body
PF: predicated region fallthrough
CT: control target
= control target key end

     0   :  { %vm59_vm0 = vcmask 130048   ;;  %s4714_s0 = inlined_call_operand.vmem [shape: f32[48,16], index: 0, kind: input, shape index: {}]   ;;  %s4715_s1 = inlined_call_operand.vmem [shape: f32[16,32], index: 1, kind: input, shape index: {}]   ;;  %s4716_s2 = inlined_call_operand.vmem [shape: f32[32,16], index: 2, kind: input, shape index: {}]   ;;  %s4717_s3 = inlined_call_operand.vmem [shape: f32[104,32], index: 3, kind: input, shape index: {}]   ;;  %s4718_s4 = inlined_call_operand.vmem [shape: f32[480,32], index: 4, kind: input, shape index: {}]   ;;  %s4719_s5 = inlined_call_operand.vmem [shape: f32[16,32], index: 5, kind: input, shape index: {}]   ;;  %s4720_s6 = inlined_call_operand.vmem [shape: f32[264,64], index: 6, kind: input, shape index: {}]   ;;  %s4721_s7 = inlined_call_operand.vmem [shape: f32[8], index: 7, kind: output, shape index: {}]  }
   0x1   :  { %v52_v0 = vld [vmem:[%s4718_s4] sm:$0xff]  ;;  %v53_v1 = vld [vmem:[%s4718_s4 + $0x8] sm:$0xff] }
   0x2   :  { %v27_v2 = vld [vmem:[%s4714_s0] sm:$0xff]  ;;  %v3613_v3 = vpack.c.bf16 %v53_v1, %v52_v0  ;;  %v144_v5 = vld [vmem:[%s4718_s4 + $0x28] sm:$0xff] }
   0x3   :  { %3278 = vmatprep.mubr.msk.f32.mxu0 %vm59_vm0, %v27_v2  ;;  %v143_v4 = vld [vmem:[%s4718_s4 + $0x20] sm:$0xff] }
   0x4   :  { %v3617_v6 = vpack.c.bf16 %v144_v5, %v143_v4 }
   0x5   :  { %12 = vsyncpa [#allocation3], 0  ;;  %3614 = vmatprep.subr.bf16.mxu0 %v3613_v3  ;;  %v28_v7 = vld [vmem:[%s4714_s0 + $0x8] sm:$0xff]  ;;  %v145_v8 = vld [vmem:[%s4718_s4 + $0x30] sm:$0xff]  ;;  %v3907_v15 = vmov 0   ;;  %vm152_vm3 = vcmask 261120  }
   0x6   :  { %3616 = vmatpush3.bf16.msra.mxu0 %v3613_v3  ;;  %3618 = vmatprep.subr.bf16.mxu1 %v3617_v6  ;;  %v146_v9 = vld [vmem:[%s4718_s4 + $0x38] sm:$0xff]  ;;  %v234_v11 = vld [vmem:[%s4718_s4 + $0x10] sm:$0xff]  ;;  %v31_v21 = vld [vmem:[%s4714_s0 + $0x20] sm:$0xff]  ;;  %s3908_s19 = smov 112   ;;  %s3909_s21 = smov 1   ;;  %vm2863_vm6 = vcmask 7168  }
   0x7   :  { %3620 = vmatpush3.bf16.msra.mxu1 %v3617_v6  ;;  %v3621_v10 = vpack.c.bf16 %v146_v9, %v145_v8  ;;  %v235_v12 = vld [vmem:[%s4718_s4 + $0x18] sm:$0xff]  ;;  %v29_v14 = vld [vmem:[%s4714_s0 + $0x10] sm:$0xff]  ;;  %3861 = vset.pattern.permute.xlu0 %v3907_v15  ;;  %v32_v24 = vld [vmem:[%s4714_s0 + $0x28] sm:$0xff]  ;;  %vm3911_vm7 = vmmov 0   ;;  %vm2384_vm8 = vcmask 523264   ;;  %vm2463_vm9 = vcmask 1024  }
   0x8   :  { %v3625_v13 = vpack.c.bf16 %v235_v12, %v234_v11  ;;  %v45_v16 = vld [vmem:[%s4717_s3 + $0x30] sm:$0xff]  ;;  %v46_v17 = vld [vmem:[%s4717_s3 + $0x38] sm:$0xff]  ;;  %3862 = vset.pattern.permute.xlu1 %v3907_v15  ;;  %v2995_v25 = vld [vmem:[%s4719_s5] ss:$0 sm:$0xff]  ;;  %s2986_s24 = sshll.u32 %s4721_s7, 4  ;;  %s2987_s24 = int_to_ptr.vmem [resolvable:$true] %s2986_s24 }
   0x9   :  { %3279 = vmatmul.mubr.msk.f32.vlgmr.msra.gmra.mrb[0].mxu0 %vm59_vm0, %v28_v7  ;;  %3622 = vmatprep.subr.bf16.mxu1 %v3621_v10  ;;  %vm1492_vm1 = vcmp.gt.f32.partialorder %v45_v16, 0.0  ;;  %v1490_v18 = vsub.f32 1.0, %v45_v16  ;;  %vm1493_vm2 = vcmp.gt.f32.partialorder %v46_v17, 0.0  ;;  %v30_v19 = vld [vmem:[%s4714_s0 + $0x18] sm:$0xff]  ;;  %v1491_v22 = vsub.f32 1.0, %v46_v17  ;;  %v342_v32 = vld [vmem:[%s4718_s4 + $0x40] sm:$0xff]  ;;  %p3898_p1 = scmp.lt.s32.totalorder %s2987_s24, %s2987_s24 }
   0xa   :  { %3296 = vmatprep.mubr.msk.f32.mxu0 %vm59_vm0, %v29_v14  ;;  %3626 = vmatprep.subr.bf16.mxu0 %v3625_v13  ;;  %v1495_v20 = vsel %vm1492_vm1, 1, %v3907_v15  ;;  %v1496_v23 = vsel %vm1493_vm2, 1, %v3907_v15  ;;  %v343_v33 = vld [vmem:[%s4718_s4 + $0x48] sm:$0xff]  ;;  %v344_v36 = vld [vmem:[%s4718_s4 + $0x50] sm:$0xff]  ;;  %v345_v37 = vld [vmem:[%s4718_s4 + $0x58] sm:$0xff]  ;;  %s3893_s28 = scalar_lea.vmem %s2987_s24, 16 }
   0xb   :  { %3624 = vmatpush3.bf16.msra.mxu1 %v3621_v10  ;;  %3628 = vmatpush3.bf16.msra.mxu0 %v3625_v13  ;;  %v3629_v34 = vpack.c.bf16 %v343_v33, %v342_v32  ;;  %v3001_v38 = vld [vmem:[%s4719_s5 + $0x2] ss:$0 sm:$0xff]  ;;  %v3633_v40 = vpack.c.bf16 %v345_v37, %v344_v36  ;;  %v2998_v52 = vld [vmem:[%s4719_s5 + $0x1] ss:$0 sm:$0xff]  ;;  %v550_v57 = vld [vmem:[%s4718_s4 + $0x88] sm:$0xff]  ;;  %p3894_p0 = scmp.ne.s32.totalorder %s2987_s24, %s3893_s28  ;;  %p3899_p2 = scmp.lt.s32.totalorder %s3893_s28, %s3893_s28 }
   0xc   :  { %1498 = vperm.xlu0 %3861, %v1495_v20   ;;  %1513 = vperm.xlu1 %3862, %v1490_v18   ;;  %v4034_v41 = vld [vmem:[%s4716_s2] sm:$0xff]  ;;  %v551_v61 = vld [vmem:[%s4718_s4 + $0x90] sm:$0xff]  ;;  %v552_v62 = vld [vmem:[%s4718_s4 + $0x98] sm:$0xff] }
   0xd   :  { %3630 = vmatprep.subr.bf16.mxu0 %v3629_v34  ;;  %v549_v56 = vld [vmem:[%s4718_s4 + $0x80] sm:$0xff]  ;;  %v4066_v63 = vld [vmem:[%s4716_s2 + $0x8] sm:$0xff]  ;;  %v4071_v0 = vld [vmem:[%s4716_s2 + $0x10] sm:$0xff]  ;;  %v3645_v1 = vpack.c.bf16 %v552_v62, %v551_v61  ;;  %p3900_p3 = por %p3899_p2, %p3898_p1 }
   0xe   :  { %3297 = vmatmul.mubr.msk.f32.vlgmr.msra.gmra.mrb[2].mxu0 %vm59_vm0, %v30_v19  ;;  %v3641_v60 = vpack.c.bf16 %v550_v57, %v549_v56  ;;  %v4080_v2 = vld [vmem:[%s4716_s2 + $0x18] sm:$0xff]  ;;  %v545_v3 = vld [vmem:[%s4718_s4 + $0x60] sm:$0xff]  ;;  %v546_v4 = vld [vmem:[%s4718_s4 + $0x68] sm:$0xff]  ;;  %s3914_s2 = smov 0.0  }
   0xf   :  { %3299 = vmatprep.mubr.msk.f32.mxu0 %vm59_vm0, %v31_v21  ;;  %3632 = vmatpush3.bf16.msra.mxu0 %v3629_v34  ;;  %v3649_v5 = vpack.c.bf16 %v546_v4, %v545_v3  ;;  %v547_v10 = vld [vmem:[%s4718_s4 + $0x70] sm:$0xff]  ;;  %v548_v11 = vld [vmem:[%s4718_s4 + $0x78] sm:$0xff]  ;;  %v3006_v14 = vld [vmem:[%s4719_s5 + $0x3] ss:$0 sm:$0xff]  ;;  %2977 = sst [smem:[#allocation2 + $0x6]] %s3914_s2  ;;  %p3901_p4 = pnand %p3900_p3, %p3894_p0 }
  0x10   :  { %1501 = vperm.xlu0 %3861, %v1496_v23   ;;  %1518 = vperm.xlu1 %3862, %v1491_v22   ;;  %v3653_v15 = vpack.c.bf16 %v548_v11, %v547_v10  ;;  %v4122_v22 = vld [vmem:[%s4715_s1] sm:$0xff]  ;;  %v3047_v3 = vld [vmem:[%s4719_s5 + $0xc] ss:$0 sm:$0xff]  ;;  %2979 = sst [smem:[#allocation2 + $0x7]] %s3914_s2 }
  0x11   :  { %3634 = vmatprep.subr.bf16.mxu0 %v3633_v40  ;;  %v845_v23 = vld [vmem:[%s4718_s4 + $0xc0] sm:$0xff] }
  0x12   :  { %3300 = vmatmul.mubr.msk.f32.gmra.mrb[4].mxu0 %vm59_vm0, %v32_v24  ;;  %v846_v24 = vld [vmem:[%s4718_s4 + $0xc8] sm:$0xff]  ;;  %v1230_v62 = vld [vmem:[%s4718_s4 + $0x1a0] sm:$0xff] }
  0x13   :  { %3636 = vmatpush3.bf16.msra.mxu0 %v3633_v40 }
  0xdc   :  { %v3280_v26 = vpop.f32.mrb[0].mxu0 }
  0xdd   :  { %v138_v27 = vadd.f32 %v3280_v26, %v2995_v25  ;;  %v132_v28 = vpop.f32.mrb[1].mxu0  ;;  %v3665_v26 = vpack.c.bf16 %v846_v24, %v845_v23 }
  0xde   :  { %v133_v29 = vadd.f32 %v2995_v25, %v132_v28  ;;  %v847_v25 = vld [vmem:[%s4718_s4 + $0xd0] sm:$0xff] }
  0xdf   :  { %v142_v31 = vmax.f32 %v138_v27, 0.0  ;;  %v848_v27 = vld [vmem:[%s4718_s4 + $0xd8] sm:$0xff]  ;;  %3666 = vmatprep.subr.bf16.mxu0 %v3665_v26 }
  0xe0   :  { %v141_v30 = vmax.f32 %v133_v29, 0.0  ;;  %v3669_v28 = vpack.c.bf16 %v848_v27, %v847_v25  ;;  %v3023_v29 = vld [vmem:[%s4719_s5 + $0x4] ss:$0 sm:$0xff]  ;;  %v1027_v25 = vld [vmem:[%s4718_s4 + $0x190] sm:$0xff] }
  0xe1   :  { %v3298_v35 = vpop.f32.mrb[2].mxu0 }
  0xe2   :  { %3289 = vmatprep.mubr.msk.f32.mxu1 %vm152_vm3, %v141_v30  ;;  %v319_v39 = vpop.f32.mrb[3].mxu0  ;;  %v325_v42 = vadd.f32 %v3298_v35, %v3001_v38 }
  0xe3   :  { %3290 = vmatmul.mubr.msk.f32.vlgmr.msra.gmra.mrb[0].mxu1 %vm152_vm3, %v142_v31  ;;  %v320_v43 = vadd.f32 %v3001_v38, %v319_v39 }
  0xe4   :  { %3320 = vmatprep.mubr.msk.f32.mxu1 %vm59_vm0, %v4034_v41  ;;  %v339_v44 = vmax.f32 %v325_v42, 0.0 }
  0xe5   :  { %v338_v45 = vmax.f32 %v320_v43, 0.0  ;;  %v3301_v46 = vpop.f32.mrb[4].mxu0 }
  0xe6   :  { %v335_v47 = vadd.f32 %v3301_v46, %v3001_v38  ;;  %v329_v48 = vpop.f32.mrb[5].mxu0  ;;  %v841_v46 = vld [vmem:[%s4718_s4 + $0xa0] sm:$0xff] }
  0xe7   :  { %v330_v49 = vadd.f32 %v3001_v38, %v329_v48  ;;  %3310 = vmatprep.mubr.msk.f32.mxu0 %vm152_vm3, %v338_v45  ;;  %v4156_v45 = vld [vmem:[%s4715_s1 + $0x8] sm:$0xff]  ;;  %s3915_s1 = smov 1.0  }
  0xe8   :  { %v341_v50 = vmax.f32 %v335_v47, 0.0  ;;  %3311 = vmatmul.mubr.msk.f32.vlgmr.msra.gmra.mrb[6].mxu0 %vm152_vm3, %v339_v44  ;;  %v842_v47 = vld [vmem:[%s4718_s4 + $0xa8] sm:$0xff] }
  0xe9   :  { %v340_v51 = vmax.f32 %v330_v49, 0.0  ;;  %3668 = vmatpush3.bf16.msra.mxu0 %v3665_v26  ;;  %v3673_v48 = vpack.c.bf16 %v842_v47, %v841_v46  ;;  %v1020_v49 = vld [vmem:[%s4718_s4 + $0x160] sm:$0xff]  ;;  %v1028_v26 = vld [vmem:[%s4718_s4 + $0x198] sm:$0xff]  ;;  %v1613_v47 = vld [vmem:[%s4718_s4 + $0x108] sm:$0xff] }
  0xea   :  { %3670 = vmatprep.subr.bf16.mxu0 %v3669_v28  ;;  %v1612_v46 = vld [vmem:[%s4718_s4 + $0x100] sm:$0xff] }
  0xeb   :  { %3313 = vmatprep.mubr.msk.f32.mxu0 %vm152_vm3, %v340_v51 }
  0xec   :  { %3314 = vmatmul.mubr.msk.f32.gmra.mrb[8].mxu0 %vm152_vm3, %v341_v50  ;;  %v1021_v50 = vld [vmem:[%s4718_s4 + $0x168] sm:$0xff] }
  0xed   :  { %3672 = vmatpush3.bf16.msra.mxu0 %v3669_v28  ;;  %v3681_v51 = vpack.c.bf16 %v1021_v50, %v1020_v49  ;;  %v3717_v49 = vpack.c.bf16 %v1613_v47, %v1612_v46 }
  0xee   :  { %3674 = vmatprep.subr.bf16.mxu0 %v3673_v48 }
 0x1b6   :  { %v3291_v53 = vpop.f32.mrb[0].mxu1 }
 0x1b7   :  { %v4045_v54 = vadd.f32 %v3291_v53, %v2998_v52  ;;  %v225_v55 = vpop.f32.mrb[1].mxu1  ;;  %v843_v53 = vld [vmem:[%s4718_s4 + $0xb0] sm:$0xff] }
 0x1b8   :  { %v4053_v58 = vadd.f32 %v2998_v52, %v225_v55  ;;  %v1499_v52 = vpop.permute.xlu0 %1498  ;;  %v844_v55 = vld [vmem:[%s4718_s4 + $0xb8] sm:$0xff] }
 0x1b9   :  { %vm1503_vm4 = vcmp.eq.s32.totalorder %v1499_v52, 1  ;;  %v1615_v52 = vld [vmem:[%s4718_s4 + $0x118] sm:$0xff] }
 0x1ba   :  { %v3637_v59 = vpack.c.bf16 %v4045_v54, %v4053_v58 }
 0x1bb   :  { %v3312_v6 = vpop.f32.mrb[6].mxu0 }
 0x1bc   :  { %3638 = vmatprep.subr.bf16.mxu1 %v3637_v59  ;;  %v429_v7 = vpop.f32.mrb[7].mxu0  ;;  %v4109_v20 = vadd.f32 %v3312_v6, %v3006_v14  ;;  %v1502_v61 = vpop.permute.xlu0 %1501  ;;  %v1233_v6 = vld [vmem:[%s4718_s4 + $0x1b8] sm:$0xff] }
 0x1bd   :  { %3640 = vmatpush3.bf16.msra.mxu1 %v3637_v59  ;;  %v4101_v16 = vadd.f32 %v3006_v14, %v429_v7  ;;  %v3677_v59 = vpack.c.bf16 %v844_v55, %v843_v53  ;;  %vm1504_vm5 = vcmp.eq.s32.totalorder %v1502_v61, 1  ;;  %v4200_v7 = vsel %vm1503_vm4, %v3047_v3, %v4053_v58  ;;  %v1610_v61 = vld [vmem:[%s4718_s4 + $0xf0] sm:$0xff] }
 0x1be   :  { %3642 = vmatprep.subr.bf16.mxu1 %v3641_v60 }
 0x1bf   :  { %v3315_v8 = vpop.f32.mrb[8].mxu0 }
 0x1c0   :  { %3321 = vmatmul.mubr.msk.f32.vlgmr.msra.gmra.mrb[2].mxu1 %vm59_vm0, %v4066_v63  ;;  %v439_v9 = vpop.f32.mrb[9].mxu0  ;;  %v4115_v21 = vadd.f32 %v3315_v8, %v3006_v14 }
 0x1c1   :  { %3323 = vmatprep.mubr.msk.f32.mxu1 %vm59_vm0, %v4071_v0  ;;  %3644 = vmatpush3.bf16.msra.mxu1 %v3641_v60  ;;  %v4105_v19 = vadd.f32 %v3006_v14, %v439_v9  ;;  %v4178_v60 = vpop.permute.xlu1 %1513  ;;  %v4205_v9 = vsel %vm1504_vm5, %v3047_v3, %v4045_v54  ;;  %v4246_v14 = vld [vmem:[%s4717_s3 + $0x60] sm:$0x3] }
 0x1c2   :  { %3646 = vmatprep.subr.bf16.mxu1 %v3645_v1  ;;  %v1521_v11 = vmul.f32 %v4178_v60, %v4200_v7  ;;  %2458 = vrot.lane.b32.xlu0 %v4246_v14, %s3908_s19 }
 0x1c4   :  { %3324 = vmatmul.mubr.msk.f32.gmra.mrb[4].mxu1 %vm59_vm0, %v4080_v2 }
 0x1c5   :  { %3648 = vmatpush3.bf16.msra.mxu1 %v3645_v1  ;;  %v1231_v1 = vld [vmem:[%s4718_s4 + $0x1a8] sm:$0xff]  ;;  %v4202_v8 = vpop.permute.xlu1 %1518 }
 0x1c6   :  { %3650 = vmatprep.subr.bf16.mxu1 %v3649_v5  ;;  %v3697_v4 = vpack.c.bf16 %v1231_v1, %v1230_v62  ;;  %v1611_v62 = vld [vmem:[%s4718_s4 + $0xf8] sm:$0xff] }
 0x293   :  { %v3322_v12 = vpop.f32.mrb[2].mxu1 }
 0x294   :  { %v526_v13 = vpop.f32.mrb[3].mxu1 }
 0x295   :  { %3334 = vmatprep.mubr.msk.f32.mxu1 %vm152_vm3, %v526_v13 }
 0x296   :  { %3335 = vmatmul.mubr.msk.f32.vlgmr.msra.gmra.mrb[6].mxu1 %vm152_vm3, %v3322_v12  ;;  %v1522_v12 = vmul.f32 %v4202_v8, %v4205_v9 }
 0x297   :  { %v3325_v17 = vpop.f32.mrb[4].mxu1  ;;  %3652 = vmatpush3.bf16.msra.mxu1 %v3649_v5  ;;  %v1232_v5 = vld [vmem:[%s4718_s4 + $0x1b0] sm:$0xff] }
 0x298   :  { %v536_v18 = vpop.f32.mrb[5].mxu1  ;;  %3654 = vmatprep.subr.bf16.mxu1 %v3653_v15  ;;  %v3701_v10 = vpack.c.bf16 %v1233_v6, %v1232_v5  ;;  %v3910_v6 = vmov 0.0|0.0  }
 0x299   :  { %3337 = vmatprep.mubr.msk.f32.mxu1 %vm152_vm3, %v536_v18 }
 0x29a   :  { %3338 = vmatmul.mubr.msk.f32.gmra.mrb[8].mxu1 %vm152_vm3, %v3325_v17  ;;  %v3030_v17 = vld [vmem:[%s4719_s5 + $0x5] ss:$0 sm:$0xff] }
 0x29b   :  { %3656 = vmatpush3.bf16.msra.mxu1 %v3653_v15  ;;  %3348 = vmatprep.mubr.msk.f32.mxu1 %vm152_vm3, %v4101_v16  ;;  %v4252_v15 = vld [vmem:[%s4717_s3 + $0x48] sm:$0xff] }
 0x29c   :  { %2914 = vrot.lane.b32.xlu0 %v4252_v15, %s3909_s21 }
 0x29e   :  { %3349 = vmatmul.mubr.msk.f32.vlgmr.msra.gmra.mrb[6].mxu1 %vm152_vm3, %v4109_v20 }
 0x29f   :  { %3351 = vmatprep.mubr.msk.f32.mxu1 %vm152_vm3, %v4105_v19 }
 0x2a2   :  { %3352 = vmatmul.mubr.msk.f32.gmra.mrb[8].mxu1 %vm152_vm3, %v4115_v21 }
 0x2a3   :  { %3362 = vmatprep.mubr.msk.f32.mxu1 %vm152_vm3, %v4122_v22 }
 0x371   :  { %v3350_v30 = vpop.f32.mrb[6].mxu1 }
 0x372   :  { %v753_v31 = vadd.f32 %v3350_v30, %v3023_v29  ;;  %v728_v32 = vpop.f32.mrb[7].mxu1  ;;  %v1235_v30 = vld [vmem:[%s4718_s4 + $0x1c0] sm:$0xff] }
 0x373   :  { %v752_v33 = vadd.f32 %v3023_v29, %v728_v32 }
 0x374   :  { %v4141_v34 = vmax.f32 %v753_v31, 0.0  ;;  %v1236_v31 = vld [vmem:[%s4718_s4 + $0x1c8] sm:$0xff] }
 0x375   :  { %v4143_v35 = vmax.f32 %v752_v33, 0.0  ;;  %v3353_v36 = vpop.f32.mrb[8].mxu1 }
 0x376   :  { %v755_v37 = vadd.f32 %v3353_v36, %v3023_v29  ;;  %v738_v38 = vpop.f32.mrb[9].mxu1  ;;  %v3705_v36 = vpack.c.bf16 %v1236_v31, %v1235_v30  ;;  %v3042_v30 = vld [vmem:[%s4719_s5 + $0xb] ss:$0 sm:$0xff] }
 0x377   :  { %v754_v39 = vadd.f32 %v3023_v29, %v738_v38  ;;  %v3657_v40 = vpack.c.bf16 %v4141_v34, %v4143_v35  ;;  %v3693_v29 = vpack.c.bf16 %v1028_v26, %v1027_v25  ;;  %v1238_v38 = vld [vmem:[%s4718_s4 + $0x1d8] sm:$0xff] }
 0x378   :  { %v4147_v42 = vmax.f32 %v755_v37, 0.0  ;;  %v1237_v37 = vld [vmem:[%s4718_s4 + $0x1d0] sm:$0xff] }
 0x379   :  { %v4149_v43 = vmax.f32 %v754_v39, 0.0  ;;  %3658 = vmatprep.subr.bf16.mxu1 %v3657_v40 }
 0x37a   :  { %3660 = vmatpush3.bf16.msra.mxu1 %v3657_v40 }
 0x37b   :  { %v3661_v44 = vpack.c.bf16 %v4147_v42, %v4149_v43 }
 0x37d   :  { %3662 = vmatprep.subr.bf16.mxu1 %v3661_v44 }
 0x37e   :  { %3664 = vmatpush3.bf16.msra.mxu1 %v3661_v44  ;;  %v3709_v44 = vpack.c.bf16 %v1238_v38, %v1237_v37 }
 0x37f   :  { %3682 = vmatprep.subr.bf16.mxu1 %v3681_v51 }
 0x381   :  { %3363 = vmatmul.mubr.msk.f32.vlgmr.msra.gmra.mrb[10].mxu1 %vm152_vm3, %v4156_v45 }
 0x382   :  { %3684 = vmatpush3.bf16.msra.mxu1 %v3681_v51  ;;  %v1614_v51 = vld [vmem:[%s4718_s4 + $0x110] sm:$0xff] }
 0x383   :  { %v3721_v55 = vpack.c.bf16 %v1615_v52, %v1614_v51 }
 0x454   :  { %v3364_v56 = vpop.f32.mrb[10].mxu1 }
 0x455   :  { %v832_v57 = vpop.f32.mrb[11].mxu1 }
 0x456   :  { %3373 = vmatprep.mubr.msk.f32.mxu0 %vm152_vm3, %v832_v57  ;;  %v1609_v57 = vld [vmem:[%s4718_s4 + $0xe8] sm:$0xff] }
 0x457   :  { %3374 = vmatmul.mubr.msk.f32.vlgmr.msra.gmra.mrb[10].mxu0 %vm152_vm3, %v3364_v56 }
 0x458   :  { %3676 = vmatpush3.bf16.msra.mxu0 %v3673_v48  ;;  %3384 = vmatprep.mubr.msk.f32.mxu0 %vm152_vm3, %v4053_v58  ;;  %v3713_v58 = vpack.c.bf16 %v1522_v12, %v1521_v11  ;;  %v3031_v12 = vld [vmem:[%s4719_s5 + $0x8] ss:$0 sm:$0xff] }
 0x459   :  { %3678 = vmatprep.subr.bf16.mxu0 %v3677_v59 }
 0x45c   :  { %3680 = vmatpush3.bf16.msra.mxu0 %v3677_v59 }
 0x45d   :  { %3698 = vmatprep.subr.bf16.mxu0 %v3697_v4 }
 0x45f   :  { %3385 = vmatmul.mubr.msk.f32.vlgmr.msra.gmra.mrb[10].mxu0 %vm152_vm3, %v4045_v54  ;;  %v1022_v54 = vld [vmem:[%s4718_s4 + $0x170] sm:$0xff] }
 0x460   :  { %3700 = vmatpush3.bf16.msra.mxu0 %v3697_v4  ;;  %3417 = vmatprep.mubr.msk.f32.mxu0 %vm152_vm3, %v4143_v35 }
 0x461   :  { %3702 = vmatprep.subr.bf16.mxu0 %v3701_v10 }
 0x464   :  { %3704 = vmatpush3.bf16.msra.mxu0 %v3701_v10 }
 0x465   :  { %3714 = vmatprep.subr.bf16.mxu0 %v3713_v58 }
 0x467   :  { %3418 = vmatmul.mubr.msk.f32.vlgmr.msra.gmra.mrb[12].mxu0 %vm152_vm3, %v4141_v34 }
 0x468   :  { %3420 = vmatprep.mubr.msk.f32.mxu0 %vm152_vm3, %v4149_v43  ;;  %3716 = vmatpush3.bf16.msra.mxu0 %v3713_v58  ;;  %v3034_v58 = vld [vmem:[%s4719_s5 + $0x9] ss:$0 sm:$0xff] }
 0x46b   :  { %3421 = vmatmul.mubr.msk.f32.gmra.mrb[14].mxu0 %vm152_vm3, %v4147_v42 }
 0x46c   :  { %3441 = vmatprep.mubr.msk.f32.mxu0 %vm59_vm0, %v4034_v41  ;;  %v1023_v41 = vld [vmem:[%s4718_s4 + $0x178] sm:$0xff] }
 0x46d   :  { %v3685_v13 = vpack.c.bf16 %v1023_v41, %v1022_v54 }
 0x46f   :  { %3442 = vmatmul.mubr.msk.f32.vlgmr.msra.gmra.mrb[16].mxu0 %vm59_vm0, %v4066_v63  ;;  %3686 = vmatprep.subr.bf16.mxu1 %v3685_v13  ;;  %v1025_v63 = vld [vmem:[%s4718_s4 + $0x180] sm:$0xff] }
 0x470   :  { %3444 = vmatprep.mubr.msk.f32.mxu0 %vm59_vm0, %v4071_v0  ;;  %3688 = vmatpush3.bf16.msra.mxu1 %v3685_v13  ;;  %v1026_v0 = vld [vmem:[%s4718_s4 + $0x188] sm:$0xff] }
 0x473   :  { %3445 = vmatmul.mubr.msk.f32.gmra.mrb[18].mxu0 %vm59_vm0, %v4080_v2  ;;  %v3689_v2 = vpack.c.bf16 %v1026_v0, %v1025_v63 }
 0x474   :  { %3483 = vmatprep.mubr.msk.f32.mxu0 %vm152_vm3, %v4122_v22 }
 0x475   :  { %3690 = vmatprep.subr.bf16.mxu1 %v3689_v2 }
 0x532   :  { %v3386_v18 = vpop.f32.mrb[10].mxu0 }
 0x533   :  { %v1017_v22 = vadd.f32 %v3386_v18, %v3030_v17  ;;  %v1002_v23 = vpop.f32.mrb[11].mxu0 }
 0x534   :  { %v1016_v24 = vadd.f32 %v3030_v17, %v1002_v23 }
 0x535   :  { %v1019_v28 = vmax.f32 %v1017_v22, 0.0 }
 0x536   :  { %v1018_v27 = vmax.f32 %v1016_v24, 0.0 }
 0x538   :  { %3395 = vmatprep.mubr.msk.f32.mxu1 %vm152_vm3, %v1018_v27 }
 0x539   :  { %3396 = vmatmul.mubr.msk.f32.vlgmr.msra.gmra.mrb[12].mxu1 %vm152_vm3, %v1019_v28 }
 0x53a   :  { %3692 = vmatpush3.bf16.msra.mxu1 %v3689_v2  ;;  %v4273_v32 = vpop.f32.mrb[12].mxu0  ;;  %3406 = vmatprep.mubr.msk.f32.mxu1 %vm152_vm3, %v1018_v27 }
 0x53b   :  { %v4276_v33 = vpop.f32.mrb[13].mxu0  ;;  %3694 = vmatprep.subr.bf16.mxu1 %v3693_v29 }
 0x53e   :  { %3696 = vmatpush3.bf16.msra.mxu1 %v3693_v29  ;;  %v4284_v39 = vpop.f32.mrb[14].mxu0 }
 0x53f   :  { %v4286_v40 = vpop.f32.mrb[15].mxu0  ;;  %3706 = vmatprep.subr.bf16.mxu1 %v3705_v36 }
 0x541   :  { %3407 = vmatmul.mubr.msk.f32.vlgmr.msra.gmra.mrb[14].mxu1 %vm152_vm3, %v1019_v28 }
 0x542   :  { %3708 = vmatpush3.bf16.msra.mxu1 %v3705_v36  ;;  %3431 = vmatprep.mubr.msk.f32.mxu1 %vm152_vm3, %v4143_v35  ;;  %v3443_v48 = vpop.f32.mrb[16].mxu0  ;;  %v1608_v35 = vld [vmem:[%s4718_s4 + $0xe0] sm:$0xff] }
 0x543   :  { %3710 = vmatprep.subr.bf16.mxu1 %v3709_v44  ;;  %v1589_v50 = vpop.f32.mrb[17].mxu0  ;;  %v3725_v59 = vpack.c.bf16 %v1609_v57, %v1608_v35  ;;  %v39_v57 = vld [vmem:[%s4717_s3] sm:$0xff] }
 0x546   :  { %3712 = vmatpush3.bf16.msra.mxu1 %v3709_v44  ;;  %v3446_v53 = vpop.f32.mrb[18].mxu0 }
 0x547   :  { %3718 = vmatprep.subr.bf16.mxu1 %v3717_v49  ;;  %v1599_v56 = vpop.f32.mrb[19].mxu0 }
 0x549   :  { %3432 = vmatmul.mubr.msk.f32.vlgmr.msra.gmra.mrb[16].mxu1 %vm152_vm3, %v4141_v34  ;;  %v3729_v34 = vpack.c.bf16 %v1611_v62, %v1610_v61 }
 0x54a   :  { %3434 = vmatprep.mubr.msk.f32.mxu1 %vm152_vm3, %v4149_v43  ;;  %3720 = vmatpush3.bf16.msra.mxu1 %v3717_v49 }
 0x54b   :  { %3722 = vmatprep.subr.bf16.mxu1 %v3721_v55 }
 0x54d   :  { %3435 = vmatmul.mubr.msk.f32.gmra.mrb[18].mxu1 %vm152_vm3, %v4147_v42  ;;  %v4336_v42 = vld [vmem:[%s4717_s3 + $0x40] sm:$0xff] }
 0x54e   :  { %3724 = vmatpush3.bf16.msra.mxu1 %v3721_v55  ;;  %3455 = vmatprep.mubr.msk.f32.mxu1 %vm152_vm3, %v1589_v50  ;;  %v40_v55 = vld [vmem:[%s4717_s3 + $0x8] sm:$0xff] }
 0x54f   :  { %3726 = vmatprep.subr.bf16.mxu1 %v3725_v59  ;;  %2912 = vrot.lane.b32.xlu1 %v4336_v42, %s3909_s21 }
 0x551   :  { %3456 = vmatmul.mubr.msk.f32.vlgmr.msra.gmra.mrb[20].mxu1 %vm152_vm3, %v3443_v48 }
 0x552   :  { %3728 = vmatpush3.bf16.msra.mxu1 %v3725_v59  ;;  %3458 = vmatprep.mubr.msk.f32.mxu1 %vm152_vm3, %v1599_v56  ;;  %v3037_v56 = vld [vmem:[%s4719_s5 + $0xa] ss:$0 sm:$0xff] }
 0x553   :  { %3730 = vmatprep.subr.bf16.mxu1 %v3729_v34 }
 0x555   :  { %3459 = vmatmul.mubr.msk.f32.gmra.mrb[22].mxu1 %vm152_vm3, %v3446_v53 }
 0x556   :  { %3732 = vmatpush3.bf16.msra.mxu1 %v3729_v34  ;;  %3469 = vmatprep.mubr.msk.f32.mxu1 %vm152_vm3, %v4101_v16  ;;  %v4343_v16 = vld [vmem:[%s4717_s3 + $0x50] sm:$0xff] }
 0x557   :  { %2916 = vrot.lane.b32.xlu1 %v4343_v16, %s3909_s21  ;;  %v2886_v1 = vsel %vm2863_vm6, %v4343_v16, 0.0  ;;  %3757 = vmatprep.subr.bf16.mxu1 %v3910_v6 }
 0x559   :  { %3470 = vmatmul.mubr.msk.f32.vlgmr.msra.gmra.mrb[20].mxu1 %vm152_vm3, %v4109_v20  ;;  %v2883_v20 = vsel %vm2863_vm6, %v4336_v42, 0.0 }
 0x55a   :  { %3472 = vmatprep.mubr.msk.f32.mxu1 %vm152_vm3, %v4105_v19  ;;  %v4350_v19 = vld [vmem:[%s4717_s3 + $0x58] sm:$0xff] }
 0x55b   :  { %2918 = vrot.lane.b32.xlu1 %v4350_v19, %s3909_s21  ;;  %v2888_v4 = vsel %vm2863_vm6, %v4350_v19, 0.0 }
 0x55d   :  { %3473 = vmatmul.mubr.msk.f32.gmra.mrb[22].mxu1 %vm152_vm3, %v4115_v21  ;;  %v2884_v21 = vsel %vm2863_vm6, %v4252_v15, 0.0 }
 0x55e   :  { %v2885_v43 = vadd.f32 %v2884_v21, %v2883_v20 }
 0x560   :  { %v2887_v3 = vadd.f32 %v2886_v1, %v2885_v43  ;;  %v4382_v43 = vadd.f32 %v4273_v32, %v3037_v56  ;;  %v3060_v32 = vld [vmem:[%s4719_s5 + $0x6] ss:$0 sm:$0xff] }
 0x562   :  { %v2889_v5 = vadd.f32 %v2888_v4, %v2887_v3  ;;  %v4385_v4 = vadd.f32 %v3037_v56, %v4276_v33 }
 0x564   :  { %2890 = vadd.xlane.f32.xlu0 %v2889_v5 }
 0x60c   :  { %v3397_v10 = vpop.f32.mrb[12].mxu1 }
 0x60d   :  { %v1106_v11 = vpop.f32.mrb[13].mxu1  ;;  %v1112_v54 = vadd.f32 %v3397_v10, %v3031_v12 }
 0x60e   :  { %v1107_v41 = vadd.f32 %v3031_v12, %v1106_v11  ;;  %v4388_v11 = vadd.f32 %v4284_v39, %v3037_v56  ;;  %v1454_v39 = vmul.f32 %v4385_v4, %v4385_v4 }
 0x60f   :  { %v1207_v17 = vmul.f32 %v1112_v54, %v1112_v54 }
 0x610   :  { %v1206_v23 = vmul.f32 %v1107_v41, %v1107_v41 }
 0x614   :  { %v3408_v13 = vpop.f32.mrb[14].mxu1 }
 0x615   :  { %v1191_v63 = vadd.f32 %v3408_v13, %v3034_v58  ;;  %v1185_v0 = vpop.f32.mrb[15].mxu1 }
 0x616   :  { %v1186_v2 = vadd.f32 %v3034_v58, %v1185_v0 }
 0x617   :  { %v1195_v18 = vmul.f32 0.5, %v1191_v63  ;;  %v1205_v22 = vadd.f32 1.0, %v1191_v63 }
 0x618   :  { %v1194_v24 = vmul.f32 0.5, %v1186_v2  ;;  %v1204_v25 = vadd.f32 1.0, %v1186_v2 }
 0x619   :  { %v1198_v26 = vmul.f32 1.442695, %v1195_v18  ;;  %v1209_v27 = vsub.f32 %v1205_v22, %v1207_v17  ;;  %v1457_v22 = vmul.f32 %v4388_v11, %v4388_v11 }
 0x61a   :  { %v1196_v28 = vmul.f32 1.442695, %v1194_v24  ;;  %v1208_v29 = vsub.f32 %v1204_v25, %v1206_v23  ;;  %v4404_v23 = vadd.f32 %v3037_v56, %v4286_v40 }
 0x61b   :  { %3863 = vpow2.f32 %v1198_v26 }
 0x61c   :  { %3865 = vpow2.f32 %v1196_v28  ;;  %v3433_v31 = vpop.f32.mrb[16].mxu1 }
 0x61d   :  { %v1417_v36 = vadd.f32 %v3433_v31, %v3042_v30  ;;  %v1411_v37 = vpop.f32.mrb[17].mxu1 }
 0x61e   :  { %v1412_v38 = vadd.f32 %v3042_v30, %v1411_v37 }
 0x61f   :  { %v1431_v44 = vmul.f32 0.5, %v1417_v36  ;;  %v1451_v13 = vadd.f32 1.0, %v1417_v36 }
 0x620   :  { %v1430_v46 = vmul.f32 0.5, %v1412_v38  ;;  %v3436_v47 = vpop.f32.mrb[18].mxu1  ;;  %v1450_v0 = vadd.f32 1.0, %v1412_v38 }
 0x621   :  { %v1436_v48 = vmul.f32 1.442695, %v1431_v44  ;;  %v1427_v49 = vadd.f32 %v3436_v47, %v3042_v30  ;;  %v1421_v50 = vpop.f32.mrb[19].mxu1 }
 0x622   :  { %v1434_v51 = vmul.f32 1.442695, %v1430_v46  ;;  %v1422_v52 = vadd.f32 %v3042_v30, %v1421_v50  ;;  %v1458_v31 = vsub.f32 %v1450_v0, %v1454_v39  ;;  %v1889_v39 = vld [vmem:[%s4718_s4 + $0x128] sm:$0xff] }
 0x623   :  { %3867 = vpow2.f32 %v1436_v48  ;;  %v1433_v53 = vmul.f32 0.5, %v1427_v49  ;;  %v1453_v24 = vadd.f32 1.0, %v1427_v49  ;;  %v1456_v48 = vmul.f32 %v4404_v23, %v4404_v23 }
 0x624   :  { %3869 = vpow2.f32 %v1434_v51  ;;  %v1432_v35 = vmul.f32 0.5, %v1422_v52  ;;  %v1452_v36 = vadd.f32 1.0, %v1422_v52 }
 0x625   :  { %v3864_v59 = vpop.eup %3863  ;;  %v1440_v61 = vmul.f32 1.442695, %v1433_v53  ;;  %v1461_v50 = vsub.f32 %v1453_v24, %v1457_v22  ;;  %v4473_v22 = vpop.permute.xlu0 %2458 }
 0x626   :  { %v3866_v62 = vpop.eup %3865  ;;  %v1438_v34 = vmul.f32 1.442695, %v1432_v35  ;;  %v1201_v20 = vmul.f32 %v3864_v59, %v40_v55  ;;  %v1211_v21 = vmul.f32 %v3864_v59, %v3864_v59  ;;  %v1460_v59 = vsub.f32 %v1452_v36, %v1456_v48 }
 0x627   :  { %3871 = vpow2.f32 %v1440_v61  ;;  %v1200_v1 = vmul.f32 %v3866_v62, %v39_v57  ;;  %v1210_v3 = vmul.f32 %v3866_v62, %v3866_v62 }
 0x628   :  { %3873 = vpow2.f32 %v1438_v34  ;;  %v1203_v5 = vadd.f32 %v1201_v20, %v1112_v54  ;;  %v1213_v10 = vsub.f32 %v1209_v27, %v1211_v21  ;;  %v1455_v54 = vmul.f32 %v4382_v43, %v4382_v43 }
 0x629   :  { %v1202_v12 = vadd.f32 %v1200_v1, %v1107_v41  ;;  %v1212_v58 = vsub.f32 %v1208_v29, %v1210_v3  ;;  %v4475_v24 = vpop.permute.xlu0 %2914 }
 0x62a   :  { %v1215_v63 = vsel %vm152_vm3, %v1213_v10, 0.0  ;;  %v1459_v28 = vsub.f32 %v1451_v13, %v1455_v54  ;;  %v1888_v54 = vld [vmem:[%s4718_s4 + $0x120] sm:$0xff] }
 0x62b   :  { %v3758_v2 = vpack.c.bf16 %v1203_v5, %v1202_v12  ;;  %v1214_v33 = vsel %vm152_vm3, %v1212_v58, 0.0 }
 0x62c   :  { %v3471_v17 = vpop.f32.mrb[20].mxu1  ;;  %v1216_v41 = vadd.f32 %v1215_v63, %v1214_v33  ;;  %v1893_v63 = vld [vmem:[%s4718_s4 + $0x148] sm:$0xff] }
 0x62d   :  { %v4399_v18 = vpop.eup %3867  ;;  %v4406_v25 = vadd.f32 %v3471_v17, %v3060_v32  ;;  %v1779_v26 = vpop.f32.mrb[21].mxu1  ;;  %3759 = vmatpush3.bf16.msra.mxu1 %v3758_v2  ;;  %v1894_v2 = vld [vmem:[%s4718_s4 + $0x150] sm:$0xff]  ;;  %v3749_v17 = vpack.c.bf16 %v1889_v39, %v1888_v54 }
 0x62e   :  { %v4408_v27 = vpop.eup %3869  ;;  %v1463_v29 = vmul.f32 %v4399_v18, %v4399_v18  ;;  %v4412_v30 = vadd.f32 %v3060_v32, %v1779_v26  ;;  %1217 = vadd.xlane.f32.xlu0 %v1216_v41  ;;  %3760 = vmatprep.subr.bf16.mxu1 %v3910_v6  ;;  %v3912_v41 = vmov 0.0   ;;  %v4477_v26 = vpop.xlane.xlu0 %2890 }
 0x62f   :  { %v1462_v40 = vmul.f32 %v4408_v27, %v4408_v27  ;;  %v1808_v37 = vmax.f32 %v4406_v25, 0.0  ;;  %3512 = vmatprep.mubr.msk.f32.mxu1 %vm3911_vm7, %v3912_v41  ;;  %v44_v25 = vld [vmem:[%s4717_s3 + $0x28] sm:$0xff] }
 0x630   :  { %v1467_v38 = vsub.f32 %v1459_v28, %v1463_v29  ;;  %v1807_v44 = vmax.f32 %v4412_v30, 0.0  ;;  %v3474_v46 = vpop.f32.mrb[22].mxu1  ;;  %3513 = vmatmul.mubr.msk.f32.vlgmr.msra.gmra.mrb[24].mxu1 %vm59_vm0, %v4246_v14  ;;  %v4479_v28 = vpop.permute.xlu1 %2912  ;;  %v42_v30 = vld [vmem:[%s4717_s3 + $0x18] sm:$0xff] }
 0x631   :  { %v4419_v47 = vpop.eup %3871  ;;  %v1466_v49 = vsub.f32 %v1458_v31, %v1462_v40  ;;  %v4423_v51 = vadd.f32 %v3474_v46, %v3060_v32  ;;  %v1789_v53 = vpop.f32.mrb[23].mxu1  ;;  %3519 = vmatprep.mubr.msk.f32.mxu1 %vm3911_vm7, %v3912_v41 }
 0x632   :  { %v4425_v55 = vpop.eup %3873  ;;  %v3733_v52 = vpack.c.bf16 %v1808_v37, %v1807_v44  ;;  %v4431_v56 = vadd.f32 %v3060_v32, %v1789_v53  ;;  %v1465_v35 = vmul.f32 %v4419_v47, %v4419_v47  ;;  %v1471_v57 = vsel %vm152_vm3, %v1467_v38, 0.0  ;;  %v1892_v32 = vld [vmem:[%s4718_s4 + $0x140] sm:$0xff] }
 0x633   :  { %v1810_v61 = vmax.f32 %v4423_v51, 0.0  ;;  %v1464_v62 = vmul.f32 %v4425_v55, %v4425_v55  ;;  %v1470_v34 = vsel %vm152_vm3, %v1466_v49, 0.0  ;;  %v3741_v0 = vpack.c.bf16 %v1893_v63, %v1892_v32  ;;  %v2216_v32 = vld [vmem:[%s4720_s6 + $0x30] sm:$0xff]  ;;  %v2371_v51 = vld [vmem:[%s4720_s6 + $0x80] sm:$0xff] }
 0x634   :  { %v1809_v20 = vmax.f32 %v4431_v56, 0.0  ;;  %3734 = vmatprep.subr.bf16.mxu0 %v3733_v52  ;;  %v1472_v21 = vadd.f32 %v1471_v57, %v1470_v34  ;;  %v1469_v3 = vsub.f32 %v1461_v50, %v1465_v35  ;;  %v4481_v40 = vpop.permute.xlu1 %2916 }
 0x635   :  { %3736 = vmatpush3.bf16.msra.mxu0 %v3733_v52  ;;  %v1468_v1 = vsub.f32 %v1460_v59, %v1464_v62 }
 0x636   :  { %v3737_v5 = vpack.c.bf16 %v1810_v61, %v1809_v20  ;;  %v1475_v58 = vsel %vm152_vm3, %v1469_v3, 0.0  ;;  %v1891_v3 = vld [vmem:[%s4718_s4 + $0x138] sm:$0xff] }
 0x637   :  { %v1473_v10 = vsel %vm152_vm3, %v1468_v1, 0.0  ;;  %v1890_v1 = vld [vmem:[%s4718_s4 + $0x130] sm:$0xff] }
 0x638   :  { %3738 = vmatprep.subr.bf16.mxu0 %v3737_v5  ;;  %v1474_v12 = vadd.f32 %v1473_v10, %v1472_v21  ;;  %v4483_v48 = vpop.permute.xlu1 %2918 }
 0x639   :  { %3740 = vmatpush3.bf16.msra.mxu0 %v3737_v5 }
 0x63a   :  { %v1476_v13 = vadd.f32 %v1475_v58, %v1474_v12  ;;  %3742 = vmatprep.subr.bf16.mxu0 %v3741_v0  ;;  %v3753_v58 = vpack.c.bf16 %v1891_v3, %v1890_v1  ;;  %v2496_v3 = vld [vmem:[%s4720_s6 + $0x50] sm:$0xff] }
 0x63c   :  { %3484 = vmatmul.mubr.msk.f32.vlgmr.msra.gmra.mrb[20].mxu0 %vm152_vm3, %v4156_v45  ;;  %1477 = vadd.xlane.f32.xlu1 %v1476_v13  ;;  %v1895_v45 = vld [vmem:[%s4718_s4 + $0x158] sm:$0xff]  ;;  %v2214_v13 = vld [vmem:[%s4720_s6 + $0x20] sm:$0xff] }
 0x63d   :  { %3744 = vmatpush3.bf16.msra.mxu0 %v3741_v0  ;;  %v3745_v33 = vpack.c.bf16 %v1895_v45, %v1894_v2  ;;  %v3067_v2 = vld [vmem:[%s4719_s5 + $0x7] ss:$0 sm:$0xff] }
 0x63f   :  { %3746 = vmatprep.subr.bf16.mxu0 %v3745_v33 }
 0x641   :  { %3748 = vmatpush3.bf16.msra.mxu0 %v3745_v33 }
 0x642   :  { %3750 = vmatprep.subr.bf16.mxu0 %v3749_v17 }
 0x6bb   :  { %v1218_v29 = vpop.xlane.xlu0 %1217 }
 0x6bc   :  { %v1219_v31 = vrot.slane %v1218_v29, 4 }
 0x6be   :  { %v1220_v36 = vadd.f32 %v1219_v31, %v1218_v29  ;;  %v2210_v31 = vld [vmem:[%s4720_s6] sm:$0xff] }
 0x6c0   :  { %v1221_v38 = vrot.slane %v1220_v36, 2 }
 0x6c2   :  { %v1222_v46 = vadd.f32 %v1221_v38, %v1220_v36  ;;  %v2211_v36 = vld [vmem:[%s4720_s6 + $0x8] sm:$0xff] }
 0x6c4   :  { %v1223_v49 = vrot.slane %v1222_v46, 1 }
 0x6c6   :  { %v1224_v50 = vadd.f32 %v1223_v49, %v1222_v46  ;;  %v3770_v46 = vpack.c.bf16 %v2211_v36, %v2210_v31  ;;  %v2212_v49 = vld [vmem:[%s4720_s6 + $0x10] sm:$0xff]  ;;  %v3083_v31 = vld [vmem:[%s4720_s6 + $0x101] ss:$0 sm:$0xff] }
 0x6c8   :  { %3835 = vpush %v1224_v50  ;;  %v2213_v50 = vld [vmem:[%s4720_s6 + $0x18] sm:$0xff] }
 0x6c9   :  { %v1478_v53 = vpop.xlane.xlu1 %1477 }
 0x6ca   :  { %v1479_v52 = vrot.slane %v1478_v53, 4 }
 0x6cc   :  { %v1480_v35 = vadd.f32 %v1479_v52, %v1478_v53  ;;  %v2498_v53 = vld [vmem:[%s4720_s6 + $0x60] sm:$0xff]  ;;  %v2499_v52 = vld [vmem:[%s4720_s6 + $0x68] sm:$0xff] }
 0x6ce   :  { %v1481_v57 = vrot.slane %v1480_v35, 2 }
 0x6d0   :  { %v1482_v59 = vadd.f32 %v1481_v57, %v1480_v35  ;;  %v3773_v35 = vpack.c.bf16 %v2213_v50, %v2212_v49  ;;  %v3787_v57 = vpack.c.bf16 %v2499_v52, %v2498_v53  ;;  %v2711_v53 = vld [vmem:[%s4720_s6 + $0xd0] sm:$0xff]  ;;  %v2712_v52 = vld [vmem:[%s4720_s6 + $0xd8] sm:$0xff] }
 0x6d2   :  { %v1483_v62 = vrot.slane %v1482_v59, 1 }
 0x6d4   :  { %v1484_v34 = vadd.f32 %v1483_v62, %v1482_v59  ;;  %v2500_v59 = vld [vmem:[%s4720_s6 + $0x70] sm:$0xff]  ;;  %v2501_v62 = vld [vmem:[%s4720_s6 + $0x78] sm:$0xff] }
 0x6d6   :  { %3837 = vpush %v1484_v34  ;;  %v3791_v34 = vpack.c.bf16 %v2501_v62, %v2500_v59  ;;  %v3807_v59 = vpack.c.bf16 %v2712_v52, %v2711_v53 }
 0x6f9   :  { %s3836_s21 = spop %3835 }
 0x6fa   :  { %s1226_s10 = smul.f32 -0.5, %s3836_s21 }
 0x6fc   :  { %s1229_s11 = smul.f32 0.0625, %s1226_s10 }
 0x6fe   :  { %2965 = sst [smem:[#allocation2]] %s1229_s11 }
 0x707   :  { %s3838_s0 = spop %3837 }
 0x708   :  { %s1486_s12 = smul.f32 -0.5, %s3838_s0 }
 0x70a   :  { %s1489_s13 = smul.f32 0.03125, %s1486_s12  ;;  %s3913_s12 = smov 127  }
 0x70c   :  { %2967 = sst [smem:[#allocation2 + $0x1]] %s1489_s13 }
 0x70f   :  { %v3485_v21 = vpop.f32.mrb[20].mxu0 }
 0x710   :  { %v1877_v5 = vpop.f32.mrb[21].mxu0  ;;  %v1887_v12 = vmul.f32 %v3485_v21, %v4202_v8  ;;  %v2495_v21 = vld [vmem:[%s4720_s6 + $0x48] sm:$0xff] }
 0x711   :  { %v1886_v10 = vmul.f32 %v1877_v5, %v4178_v60  ;;  %v2136_v60 = vpop.f32.mrb[24].mxu1  ;;  %v2497_v5 = vld [vmem:[%s4720_s6 + $0x58] sm:$0xff] }
 0x712   :  { %v3514_v8 = vpop.f32.mrb[25].mxu1 }
 0x713   :  { %3494 = vmatprep.mubr.msk.f32.mxu0 %vm152_vm3, %v1886_v10  ;;  %v41_v10 = vld [vmem:[%s4717_s3 + $0x10] sm:$0xff] }
 0x714   :  { %3495 = vmatmul.mubr.msk.f32.vlgmr.msra.gmra.mrb[22].mxu0 %vm152_vm3, %v1887_v12  ;;  %v3799_v12 = vpack.c.bf16 %v2497_v5, %v2496_v3  ;;  %v2716_v3 = vld [vmem:[%s4720_s6 + $0xf8] sm:$0xff] }
 0x715   :  { %3752 = vmatpush3.bf16.msra.mxu0 %v3749_v17  ;;  %3505 = vmatprep.mubr.msk.f32.mxu0 %vm152_vm3, %v4200_v7  ;;  %v2215_v7 = vld [vmem:[%s4720_s6 + $0x28] sm:$0xff] }
 0x716   :  { %3754 = vmatprep.subr.bf16.mxu0 %v3753_v58  ;;  %v3764_v63 = vpack.c.bf16 %v2215_v7, %v2214_v13  ;;  %v2375_v13 = vld [vmem:[%s4720_s6 + $0xa0] sm:$0xff]  ;;  %v2376_v7 = vld [vmem:[%s4720_s6 + $0xa8] sm:$0xff] }
 0x719   :  { %3756 = vmatpush3.bf16.msra.mxu0 %v3753_v58  ;;  %v43_v58 = vld [vmem:[%s4717_s3 + $0x20] sm:$0xff] }
 0x71a   :  { %3763 = vmatprep.subr.bf16.mxu0 %v3910_v6 }
 0x71c   :  { %3506 = vmatmul.mubr.msk.f32.vlgmr.msra.gmra.mrb[22].mxu0 %vm152_vm3, %v4205_v9  ;;  %v2217_v9 = vld [vmem:[%s4720_s6 + $0x38] sm:$0xff] }
 0x71d   :  { %3530 = vmatprep.mubr.msk.f32.mxu0 %vm3911_vm7, %v3912_v41  ;;  %3765 = vmatpush3.bf16.msra.mxu0 %v3764_v63  ;;  %v3767_v0 = vpack.c.bf16 %v2217_v9, %v2216_v32  ;;  %v3782_v32 = vpack.c.bf16 %v2376_v7, %v2375_v13 }
 0x71e   :  { %3766 = vmatprep.subr.bf16.mxu0 %v3910_v6 }
 0x721   :  { %3768 = vmatpush3.bf16.msra.mxu0 %v3767_v0 }
 0x722   :  { %3775 = vmatprep.subr.bf16.mxu0 %v3910_v6 }
 0x7ef   :  { %v3507_v45 = vpop.f32.mrb[22].mxu0 }
 0x7f0   :  { %v2064_v33 = vadd.f32 %v3507_v45, %v3067_v2  ;;  %v2049_v54 = vpop.f32.mrb[23].mxu0 }
 0x7f1   :  { %v2063_v39 = vadd.f32 %v3067_v2, %v2049_v54  ;;  %v2378_v54 = vld [vmem:[%s4720_s6 + $0xb8] sm:$0xff] }
 0x7f2   :  { %v2066_v17 = vmax.f32 %v2064_v33, 0.0  ;;  %v2377_v33 = vld [vmem:[%s4720_s6 + $0xb0] sm:$0xff] }
 0x7f3   :  { %v2065_v29 = vmax.f32 %v2063_v39, 0.0  ;;  %v3785_v39 = vpack.c.bf16 %v2378_v54, %v2377_v33 }
 0x7f5   :  { %v3761_v38 = vpack.c.bf16 %v2066_v17, %v2065_v29  ;;  %v2709_v17 = vld [vmem:[%s4720_s6 + $0xc0] sm:$0xff] }
 0x7f7   :  { %3762 = vmatpush3.bf16.msra.mxu1 %v3761_v38  ;;  %v3072_v38 = vld [vmem:[%s4720_s6 + $0x100] ss:$0 sm:$0xff] }
 0x7f8   :  { %3769 = vmatprep.subr.bf16.mxu1 %v3910_v6 }
 0x7fa   :  { %3520 = vmatmul.mubr.msk.f32.vlgmr.msra.gmra.mrb[26].mxu1 %vm59_vm0, %v4246_v14  ;;  %v2494_v14 = vld [vmem:[%s4720_s6 + $0x40] sm:$0xff] }
 0x7fb   :  { %3771 = vmatpush3.bf16.msra.mxu1 %v3770_v46  ;;  %3541 = vmatprep.mubr.msk.f32.mxu1 %vm3911_vm7, %v3912_v41  ;;  %v3795_v1 = vpack.c.bf16 %v2495_v21, %v2494_v14  ;;  %v2714_v14 = vld [vmem:[%s4720_s6 + $0xe8] sm:$0xff] }
 0x7fc   :  { %3772 = vmatprep.subr.bf16.mxu1 %v3910_v6 }
 0x7ff   :  { %3774 = vmatpush3.bf16.msra.mxu1 %v3773_v35 }
 0x800   :  { %3788 = vmatprep.subr.bf16.mxu1 %v3787_v57 }
 0x802   :  { %3542 = vmatmul.mubr.msk.f32.vlgmr.msra.gmra.mrb[28].mxu1 %vm152_vm3, %v2136_v60  ;;  %v1443_v60 = vmul.f32 %v4399_v18, %v42_v30  ;;  %v1445_v18 = vmul.f32 %v4419_v47, %v44_v25  ;;  %v2374_v47 = vld [vmem:[%s4720_s6 + $0x98] sm:$0xff] }
 0x803   :  { %3790 = vmatpush3.bf16.msra.mxu1 %v3787_v57  ;;  %3571 = vmatprep.mubr.msk.f32.mxu1 %vm152_vm3, %v1807_v44  ;;  %v1442_v44 = vmul.f32 %v4408_v27, %v41_v10  ;;  %v1444_v27 = vmul.f32 %v4425_v55, %v43_v58 }
 0x804   :  { %3792 = vmatprep.subr.bf16.mxu1 %v3791_v34 }
 0x805   :  { %v1446_v8 = vadd.f32 %v1442_v44, %v4385_v4  ;;  %v1448_v56 = vadd.f32 %v1444_v27, %v4404_v23  ;;  %v1449_v4 = vadd.f32 %v1445_v18, %v4388_v11  ;;  %v2373_v23 = vld [vmem:[%s4720_s6 + $0x90] sm:$0xff] }
 0x807   :  { %3794 = vmatpush3.bf16.msra.mxu1 %v3791_v34  ;;  %v2713_v34 = vld [vmem:[%s4720_s6 + $0xe0] sm:$0xff] }
 0x808   :  { %3796 = vmatprep.subr.bf16.mxu1 %v3795_v1  ;;  %v3811_v21 = vpack.c.bf16 %v2714_v14, %v2713_v34 }
 0x80a   :  { %3572 = vmatmul.mubr.msk.f32.vlgmr.msra.gmra.mrb[30].mxu1 %vm152_vm3, %v1808_v37  ;;  %v1447_v37 = vadd.f32 %v1443_v60, %v4382_v43  ;;  %v2372_v43 = vld [vmem:[%s4720_s6 + $0x88] sm:$0xff] }
 0x80b   :  { %3574 = vmatprep.mubr.msk.f32.mxu1 %vm152_vm3, %v1809_v20  ;;  %3798 = vmatpush3.bf16.msra.mxu1 %v3795_v1  ;;  %v3776_v55 = vpack.c.bf16 %v2372_v43, %v2371_v51  ;;  %v3779_v20 = vpack.c.bf16 %v2374_v47, %v2373_v23  ;;  %v2715_v1 = vld [vmem:[%s4720_s6 + $0xf0] sm:$0xff] }
 0x80c   :  { %3800 = vmatprep.subr.bf16.mxu1 %v3799_v12  ;;  %v3815_v5 = vpack.c.bf16 %v2716_v3, %v2715_v1 }
 0x80e   :  { %3575 = vmatmul.mubr.msk.f32.gmra.mrb[32].mxu1 %vm152_vm3, %v1810_v61 }
 0x80f   :  { %3802 = vmatpush3.bf16.msra.mxu1 %v3799_v12  ;;  %3585 = vmatprep.mubr.msk.f32.mxu1 %vm152_vm3, %v1446_v8  ;;  %v3073_v8 = vld [vmem:[%s4720_s6 + $0x102] ss:$0 sm:$0xff] }
 0x812   :  { %3586 = vmatmul.mubr.msk.f32.vlgmr.msra.gmra.mrb[30].mxu1 %vm152_vm3, %v1447_v37 }
 0x813   :  { %3588 = vmatprep.mubr.msk.f32.mxu1 %vm152_vm3, %v1448_v56 }
 0x816   :  { %3589 = vmatmul.mubr.msk.f32.gmra.mrb[32].mxu1 %vm152_vm3, %v1449_v4  ;;  %v3084_v4 = vld [vmem:[%s4720_s6 + $0x103] ss:$0 sm:$0xff] }
 0x8cd   :  { %v2206_v11 = vpop.f32.mrb[26].mxu1 }
 0x8ce   :  { %v3521_v61 = vpop.f32.mrb[27].mxu1  ;;  %3531 = vmatmul.mubr.msk.f32.vlgmr.msra.gmra.mrb[24].mxu0 %vm152_vm3, %v2206_v11 }
 0x8cf   :  { %3777 = vmatpush3.bf16.msra.mxu0 %v3776_v55  ;;  %3560 = vmatprep.mubr.msk.f32.mxu0 %vm3911_vm7, %v3912_v41 }
 0x8d0   :  { %3778 = vmatprep.subr.bf16.mxu0 %v3910_v6 }
 0x8d3   :  { %3780 = vmatpush3.bf16.msra.mxu0 %v3779_v20 }
 0x8d4   :  { %3781 = vmatprep.subr.bf16.mxu0 %v3910_v6 }
 0x8d5   :  { %v2360_v63 = vpop.f32.mrb[28].mxu1 }
 0x8d6   :  { %v3543_v9 = vpop.f32.mrb[29].mxu1 }
 0x8d7   :  { %3783 = vmatpush3.bf16.msra.mxu0 %v3782_v32 }
 0x8d8   :  { %3784 = vmatprep.subr.bf16.mxu0 %v3910_v6  ;;  %v2710_v6 = vld [vmem:[%s4720_s6 + $0xc8] sm:$0xff] }
 0x8d9   :  { %v3803_v29 = vpack.c.bf16 %v2710_v6, %v2709_v17 }
 0x8db   :  { %3786 = vmatpush3.bf16.msra.mxu0 %v3785_v39 }
 0x8dc   :  { %3804 = vmatprep.subr.bf16.mxu0 %v3803_v29 }
 0x8e5   :  { %v3587_v41 = vpop.f32.mrb[30].mxu1 }
 0x8e6   :  { %v2677_v0 = vpop.f32.mrb[31].mxu1  ;;  %v2702_v10 = vadd.f32 %v3587_v41, %v3083_v31 }
 0x8e7   :  { %v2701_v50 = vadd.f32 %v3083_v31, %v2677_v0 }
 0x8e8   :  { %v2706_v30 = vmax.f32 %v2702_v10, 0.0 }
 0x8e9   :  { %v3590_v2 = vpop.f32.mrb[32].mxu1  ;;  %v2705_v62 = vmax.f32 %v2701_v50, 0.0 }
 0x8ea   :  { %v2687_v45 = vpop.f32.mrb[33].mxu1  ;;  %v2704_v44 = vadd.f32 %v3590_v2, %v3083_v31 }
 0x8eb   :  { %v2703_v12 = vadd.f32 %v3083_v31, %v2687_v45 }
 0x8ec   :  { %v2708_v60 = vmax.f32 %v2704_v44, 0.0 }
 0x8ed   :  { %v2707_v58 = vmax.f32 %v2703_v12, 0.0 }
 0x9a1   :  { %v2287_v36 = vpop.f32.mrb[24].mxu0 }
 0x9a2   :  { %v2361_v46 = vadd.f32 %v2360_v63, %v2287_v36  ;;  %v3532_v49 = vpop.f32.mrb[25].mxu0 }
 0x9a4   :  { %v2369_v35 = vadd.f32 %v3072_v38, %v2361_v46 }
 0x9a6   :  { %v2370_v57 = vmax.f32 %v2369_v35, 0.0 }
 0x9a8   :  { %3561 = vmatmul.mubr.msk.f32.vlgmr.msra.gmra.mrb[26].mxu0 %vm2384_vm8, %v2370_v57 }
 0x9a9   :  { %3806 = vmatpush3.bf16.msra.mxu0 %v3803_v29  ;;  %3607 = vmatprep.mubr.msk.f32.mxu0 %vm2384_vm8, %v2705_v62 }
 0x9aa   :  { %3808 = vmatprep.subr.bf16.mxu0 %v3807_v59 }
 0x9ad   :  { %3810 = vmatpush3.bf16.msra.mxu0 %v3807_v59 }
 0x9ae   :  { %3812 = vmatprep.subr.bf16.mxu0 %v3811_v21 }
 0x9b1   :  { %3814 = vmatpush3.bf16.msra.mxu0 %v3811_v21 }
 0x9b2   :  { %3816 = vmatprep.subr.bf16.mxu0 %v3815_v5 }
 0x9b5   :  { %3818 = vmatpush3.bf16.msra.mxu0 %v3815_v5 }
 0x9b8   :  { %3608 = vmatmul.mubr.msk.f32.vlgmr.msra.gmra.mrb[28].mxu0 %vm2384_vm8, %v2706_v30 }
 0x9b9   :  { %3610 = vmatprep.mubr.msk.f32.mxu0 %vm2384_vm8, %v2707_v58 }
 0x9bc   :  { %3611 = vmatmul.mubr.msk.f32.gmra.mrb[30].mxu0 %vm2384_vm8, %v2708_v60 }
 0xa7b   :  { %v2454_v27 = vpop.f32.mrb[26].mxu0 }
 0xa7c   :  { %v2455_v25 = vadd.f32 %v3073_v8, %v2454_v27  ;;  %v3562_v37 = vpop.f32.mrb[27].mxu0 }
 0xa7e   :  { %v2461_v18 = vsub.f32 %v2455_v25, %v4473_v22 }
 0xa80   :  { %v2462_v56 = vmul.f32 %v2461_v18, %v2461_v18 }
 0xa82   :  { %2478 = vrot.lane.b32.xlu0 %v2462_v56, %s3913_s12 }
 0xa8b   :  { %v3609_v51 = vpop.f32.mrb[28].mxu0 }
 0xa8c   :  { %v2806_v43 = vadd.f32 %v3609_v51, %v3084_v4  ;;  %v2800_v55 = vpop.f32.mrb[29].mxu0 }
 0xa8d   :  { %v2801_v23 = vadd.f32 %v3084_v4, %v2800_v55 }
 0xa8e   :  { %v2832_v47 = vand.u32 2147483647, %v2806_v43  ;;  %v2901_v11 = vsub.f32 %v2806_v43, %v4252_v15  ;;  %v2820_v52 = vmax.f32 %v2806_v43, 0.0  ;;  %v2824_v35 = vmul.f32 %v2806_v43, %v4252_v15 }
 0xa8f   :  { %v2831_v61 = vand.u32 2147483647, %v2801_v23  ;;  %v3612_v20 = vpop.f32.mrb[30].mxu0  ;;  %v2819_v57 = vmax.f32 %v2801_v23, 0.0  ;;  %v2823_v59 = vmul.f32 %v2801_v23, %v4336_v42  ;;  %v2900_v34 = vsub.f32 %v2801_v23, %v4336_v42 }
 0xa90   :  { %v2836_v13 = vsub.f32 0.0, %v2832_v47  ;;  %v4672_v7 = vadd.f32 %v3612_v20, %v3084_v4  ;;  %v2810_v22 = vpop.f32.mrb[31].mxu0  ;;  %v2905_v32 = vmul.f32 %v2901_v11, %v2901_v11  ;;  %v2828_v3 = vsub.f32 %v2820_v52, %v2824_v35 }
 0xa91   :  { %v2835_v63 = vsub.f32 0.0, %v2831_v61  ;;  %v4674_v9 = vadd.f32 %v3084_v4, %v2810_v22  ;;  %v2827_v1 = vsub.f32 %v2819_v57, %v2823_v59  ;;  %v2904_v42 = vmul.f32 %v2900_v34, %v2900_v34 }
 0xa92   :  { %v2841_v41 = vmul.f32 1.442695, %v2836_v13  ;;  %v2834_v0 = vand.u32 2147483647, %v4672_v7  ;;  %v2925_v2 = vmul.f32 %v4475_v24, %v2905_v32  ;;  %v2464_v24 = vsel %vm2463_vm9, %v2462_v56, 0.0 }
 0xa93   :  { %v2839_v45 = vmul.f32 1.442695, %v2835_v63  ;;  %v2833_v33 = vand.u32 2147483647, %v4674_v9  ;;  %v2822_v21 = vmax.f32 %v4672_v7, 0.0  ;;  %v2821_v10 = vmax.f32 %v4674_v9, 0.0 }
 0xa94   :  { %3875 = vpow2.f32 %v2841_v41  ;;  %v2838_v54 = vsub.f32 0.0, %v2834_v0  ;;  %2934 = vrot.lane.b32.xlu1 %v2925_v2, %s3913_s12  ;;  %v2825_v12 = vmul.f32 %v4674_v9, %v4343_v16  ;;  %v2826_v15 = vmul.f32 %v4672_v7, %v4350_v19 }
 0xa95   :  { %3877 = vpow2.f32 %v2839_v45  ;;  %v2837_v39 = vsub.f32 0.0, %v2833_v33  ;;  %v2924_v23 = vmul.f32 %v4479_v28, %v2904_v42  ;;  %v2902_v13 = vsub.f32 %v4674_v9, %v4343_v16 }
 0xa96   :  { %v2845_v17 = vmul.f32 1.442695, %v2838_v54  ;;  %v2829_v37 = vsub.f32 %v2821_v10, %v2825_v12  ;;  %v2830_v18 = vsub.f32 %v2822_v21, %v2826_v15  ;;  %v2903_v41 = vsub.f32 %v4672_v7, %v4350_v19 }
 0xa97   :  { %v2843_v6 = vmul.f32 1.442695, %v2837_v39  ;;  %v2906_v22 = vmul.f32 %v2902_v13, %v2902_v13  ;;  %v2892_v19 = vrot.slane %v4477_v26, 4 }
 0xa98   :  { %3879 = vpow2.f32 %v2845_v17  ;;  %v2907_v0 = vmul.f32 %v2903_v41, %v2903_v41 }
 0xa99   :  { %3881 = vpow2.f32 %v2843_v6  ;;  %v2926_v32 = vmul.f32 %v4481_v40, %v2906_v22 }
 0xa9a   :  { %v2927_v2 = vmul.f32 %v4483_v48, %v2907_v0 }
 0xa9e   :  { %v3876_v29 = vpop.eup %3875 }
 0xa9f   :  { %v3878_v31 = vpop.eup %3877  ;;  %v2848_v36 = vadd.f32 1.0, %v3876_v29 }
 0xaa0   :  { %v2847_v38 = vadd.f32 1.0, %v3878_v31  ;;  %v2893_v31 = vadd.f32 %v2892_v19, %v4477_v26 }
 0xaa1   :  { %2465 = vadd.xlane.f32.xlu0 %v2464_v24  ;;  %3883 = vlog2.f32 %v2848_v36 }
 0xaa2   :  { %v3880_v46 = vpop.eup %3879  ;;  %3885 = vlog2.f32 %v2847_v38 }
 0xaa3   :  { %v3882_v49 = vpop.eup %3881  ;;  %v2850_v50 = vadd.f32 1.0, %v3880_v46 }
 0xaa4   :  { %v2849_v53 = vadd.f32 1.0, %v3882_v49  ;;  %v2894_v49 = vrot.slane %v2893_v31, 2 }
 0xaa5   :  { %3887 = vlog2.f32 %v2850_v50 }
 0xaa6   :  { %3889 = vlog2.f32 %v2849_v53  ;;  %v2895_v26 = vadd.f32 %v2894_v49, %v2893_v31 }
 0xaa8   :  { %v2896_v12 = vrot.slane %v2895_v26, 1 }
 0xaab   :  { %v3884_v62 = vpop.eup %3883 }
 0xaac   :  { %v3886_v14 = vpop.eup %3885  ;;  %v2854_v5 = vmul.f32 0.6931472, %v3884_v62 }
 0xaad   :  { %v2852_v30 = vmul.f32 0.6931472, %v3886_v14 }
 0xaae   :  { %v2860_v44 = vadd.f32 %v2854_v5, %v2828_v3 }
 0xaaf   :  { %v3888_v58 = vpop.eup %3887  ;;  %v2859_v60 = vadd.f32 %v2852_v30, %v2827_v1 }
 0xab0   :  { %v3890_v8 = vpop.eup %3889  ;;  %v2858_v27 = vmul.f32 0.6931472, %v3888_v58  ;;  %v2865_v25 = vsel %vm2863_vm6, %v2860_v44, 0.0  ;;  %v2897_v44 = vadd.f32 %v2896_v12, %v2895_v26 }
 0xab1   :  { %v2856_v56 = vmul.f32 0.6931472, %v3890_v8  ;;  %v2864_v4 = vsel %vm2863_vm6, %v2859_v60, 0.0 }
 0xab2   :  { %v2866_v51 = vadd.f32 %v2865_v25, %v2864_v4  ;;  %v2862_v55 = vadd.f32 %v2858_v27, %v2830_v18 }
 0xab3   :  { %v2861_v43 = vadd.f32 %v2856_v56, %v2829_v37 }
 0xab4   :  { %v2869_v61 = vsel %vm2863_vm6, %v2862_v55, 0.0 }
 0xab5   :  { %v2867_v47 = vsel %vm2863_vm6, %v2861_v43, 0.0 }
 0xab6   :  { %v2868_v11 = vadd.f32 %v2867_v47, %v2866_v51 }
 0xab7   :  { %2932 = vrot.lane.b32.xlu0 %v2924_v23, %s3913_s12 }
 0xab8   :  { %v2870_v20 = vadd.f32 %v2869_v61, %v2868_v11 }
 0xaba   :  { %2871 = vadd.xlane.f32.xlu1 %v2870_v20 }
 0xacb   :  { %2936 = vrot.lane.b32.xlu1 %v2926_v32, %s3913_s12 }
 0xaf4   :  { %v2479_v63 = vpop.permute.xlu0 %2478 }
 0xaf5   :  { %v2481_v28 = vsel %vm2463_vm9, %v2479_v63, 0.0 }
 0xaf6   :  { %2482 = vadd.xlane.f32.xlu0 %v2481_v28 }
 0xb06   :  { %v2935_v17 = vpop.permute.xlu1 %2934 }
 0xb07   :  { %v2945_v50 = vsel %vm2863_vm6, %v2935_v17, 0.0 }
 0xb0c   :  { %2938 = vrot.lane.b32.xlu0 %v2927_v2, %s3913_s12 }
 0xb2e   :  { %v2466_v45 = vpop.xlane.xlu0 %2465 }
 0xb2f   :  { %v2467_v33 = vrot.slane %v2466_v45, 4 }
 0xb31   :  { %v2468_v16 = vadd.f32 %v2467_v33, %v2466_v45 }
 0xb32   :  { %v2933_v7 = vpop.permute.xlu0 %2932 }
 0xb33   :  { %v2469_v9 = vrot.slane %v2468_v16, 2  ;;  %v2944_v38 = vsel %vm2863_vm6, %v2933_v7, 0.0 }
 0xb34   :  { %v2946_v35 = vadd.f32 %v2945_v50, %v2944_v38 }
 0xb35   :  { %v2470_v54 = vadd.f32 %v2469_v9, %v2468_v16 }
 0xb37   :  { %v2471_v40 = vrot.slane %v2470_v54, 1 }
 0xb39   :  { %v2472_v39 = vadd.f32 %v2471_v40, %v2470_v54 }
 0xb3b   :  { %3839 = vpush %v2472_v39 }
 0xb47   :  { %v2872_v6 = vpop.xlane.xlu1 %2871 }
 0xb48   :  { %v2873_v29 = vrot.slane %v2872_v6, 4 }
 0xb4a   :  { %v2874_v48 = vadd.f32 %v2873_v29, %v2872_v6 }
 0xb4b   :  { %v2937_v36 = vpop.permute.xlu1 %2936 }
 0xb4c   :  { %v2875_v24 = vrot.slane %v2874_v48, 2  ;;  %v2947_v53 = vsel %vm2863_vm6, %v2937_v36, 0.0 }
 0xb4d   :  { %v2948_v59 = vadd.f32 %v2947_v53, %v2946_v35 }
 0xb4e   :  { %v2876_v34 = vadd.f32 %v2875_v24, %v2874_v48 }
 0xb50   :  { %v2877_v5 = vrot.slane %v2876_v34, 1 }
 0xb52   :  { %v2878_v30 = vadd.f32 %v2877_v5, %v2876_v34 }
 0xb6c   :  { %s3840_s6 = spop %3839 }
 0xb6d   :  { %s2476_s15 = smul.f32 0.5, %s3840_s6 }
 0xb6f   :  { %2969 = sst [smem:[#allocation2 + $0x2]] %s2476_s15 }
 0xb83   :  { %v2483_v46 = vpop.xlane.xlu0 %2482 }
 0xb84   :  { %v2484_v52 = vrot.slane %v2483_v46, 4 }
 0xb86   :  { %v2485_v57 = vadd.f32 %v2484_v52, %v2483_v46 }
 0xb87   :  { %v2939_v62 = vpop.permute.xlu0 %2938 }
 0xb88   :  { %v2486_v14 = vrot.slane %v2485_v57, 2  ;;  %v2949_v21 = vsel %vm2863_vm6, %v2939_v62, 0.0 }
 0xb89   :  { %v2950_v1 = vadd.f32 %v2949_v21, %v2948_v59 }
 0xb8a   :  { %v2487_v3 = vadd.f32 %v2486_v14, %v2485_v57 }
 0xb8b   :  { %2951 = vadd.xlane.f32.xlu1 %v2950_v1 }
 0xb8c   :  { %v2488_v10 = vrot.slane %v2487_v3, 1 }
 0xb8e   :  { %v2489_v15 = vadd.f32 %v2488_v10, %v2487_v3 }
 0xb90   :  { %3841 = vpush %v2489_v15 }
 0xb91   :  { %3843 = vpush %v2878_v30 }
 0xb92   :  { %3845 = vpush %v2897_v44 }
 0xbc1   :  { %s3842_s16 = spop %3841 }
 0xbc2   :  { %s2493_s17 = smul.f32 0.5, %s3842_s16  ;;  %s3844_s4 = spop %3843 }
 0xbc3   :  { %s2882_s18 = smul.f32 0.03125, %s3844_s4  ;;  %s3846_s19 = spop %3845 }
 0xbc4   :  { %2971 = sst [smem:[#allocation2 + $0x3]] %s2493_s17  ;;  %s2899_s20 = smax.f32 %s3915_s1, %s3846_s19 }
 0xbc5   :  { %2973 = sst [smem:[#allocation2 + $0x4]] %s2882_s18  ;;  %v2960_v58 = vstv %s2899_s20 }
 0xbc6   :  { %3891 = vrcp.f32 %v2960_v58 }
 0xbd0   :  { %v3892_v56 = vpop.eup %3891 }
 0xc18   :  { %v2952_v60 = vpop.xlane.xlu1 %2951 }
 0xc19   :  { %v2953_v8 = vrot.slane %v2952_v60, 4 }
 0xc1b   :  { %v2954_v42 = vadd.f32 %v2953_v8, %v2952_v60 }
 0xc1d   :  { %v2955_v27 = vrot.slane %v2954_v42, 2 }
 0xc1f   :  { %v2956_v25 = vadd.f32 %v2955_v27, %v2954_v42 }
 0xc21   :  { %v2957_v37 = vrot.slane %v2956_v25, 1 }
 0xc23   :  { %v2958_v18 = vadd.f32 %v2957_v37, %v2956_v25 }
 0xc25   :  { %3847 = vpush %v2958_v18 }
 0xc26   :  { %3849 = vpush %v3892_v56 }
 0xc56   :  { %s3848_s25 = spop %3847 }
 0xc57   :  { %s3850_s26 = spop %3849 }
 0xc58   :  { %s2963_s27 = smul.f32 %s3850_s26, %s3848_s25 }
 0xc5a   :  { %2975 = sst [smem:[#allocation2 + $0x5]] %s2963_s27 }
 0xc5b   :  { %3904 = shalt.err (!%p3901_p4)
}
 0xc5c   :  { %s3916_s29 = smov [#allocation2]  }
 0xc5d   :  { %2989 = dma.smem_to_vmem %s3916_s29, 16, %s2987_s24, [#allocation3]  }
 0xc5e   :  { %3905 = dma.done.wait [#allocation3], 16  }
 0xc5f   :  { %3906 = vsyncadd [#allocation3], 4294967280 }
 0xc60   :  { %2993 = sfence }
 0xc61   :  { %2994 = vsyncpa [#allocation3], 1 }

</bundles_post_ra>
